<compile_context>
chip_gen: v6e
topology: v6e:2x2x1
jax: 0.10.0
libtpu: 0.0.40
codegen_flags: <defaults>
</compile_context>

<pallas_src>
import jax
import jax.numpy as jnp
from jax import lax
from jax.experimental import pallas as pl
from jax.experimental.pallas import tpu as pltpu


# --------------------------------------------------------------------------
# Fused Pallas kernel: BiLSTM recurrence + MLP head
# --------------------------------------------------------------------------

def _stack_lstm_kernel(x_ref, feat_ref,
                       wih_f_ref, whh_f_ref, b_f_ref,
                       wih_b_ref, whh_b_ref, b_b_ref,
                       w1_ref, b1_ref, w2_ref, b2_ref, w3_ref, b3_ref,
                       w4_ref, b4_ref, out_ref):
    """
    x_ref:    (T*B, E)  time-major inputs, flattened over (T, B)
    feat_ref: (B, F)    extra per-example features
    w*_ref:   fused LSTM weights (E,4H)/(H,4H)/(1,4H) per direction, MLP weights (in,out)/(1,out)
    out_ref:  (B, C)    logits
    """
    f32 = jnp.float32
    B = feat_ref.shape[0]
    E = x_ref.shape[1]
    T = x_ref.shape[0] // B
    H = whh_f_ref.shape[0]

    x_flat = x_ref[...]                                        # (T*B, E)

    # ---- hoisted input projections (outside the serial chain), bias folded in ----
    xp_f = jnp.dot(x_flat, wih_f_ref[...], preferred_element_type=f32) + b_f_ref[...]
    xp_b = jnp.dot(x_flat, wih_b_ref[...], preferred_element_type=f32) + b_b_ref[...]

    whh_f = whh_f_ref[...]
    whh_b = whh_b_ref[...]

    def cell(xp_row, h, c, whh):
        gates = xp_row + jnp.dot(h, whh, preferred_element_type=f32)   # (B, 4H)
        i = jax.nn.sigmoid(gates[:, 0:H])
        f = jax.nn.sigmoid(gates[:, H:2 * H])
        g = jnp.tanh(gates[:, 2 * H:3 * H])
        o = jax.nn.sigmoid(gates[:, 3 * H:4 * H])
        c_new = f * c + i * g
        h_new = o * jnp.tanh(c_new)
        return h_new, c_new

    zeros = jnp.zeros((B, H), f32)
    h_f, c_f = zeros, zeros
    h_b, c_b = zeros, zeros

    # Static unroll over the (small, fixed) sequence length; slices below are static.
    for t in range(T):
        tb = T - 1 - t                                        # backward direction index
        h_f, c_f = cell(xp_f[t * B:(t + 1) * B, :], h_f, c_f, whh_f)
        h_b, c_b = cell(xp_b[tb * B:(tb + 1) * B, :], h_b, c_b, whh_b)

    # ---- cat(hidden[-2], hidden[-1], features) -> fc1..fc4 head ----
    concat = jnp.concatenate([h_f, h_b, feat_ref[...]], axis=1)        # (B, 2H+F)
    o1 = jnp.tanh(jnp.dot(concat, w1_ref[...], preferred_element_type=f32) + b1_ref[...])
    o2 = jnp.tanh(jnp.dot(o1, w2_ref[...], preferred_element_type=f32) + b2_ref[...])
    o3 = jnp.tanh(jnp.dot(o2, w3_ref[...], preferred_element_type=f32) + b3_ref[...])
    out_ref[...] = jnp.dot(o3, w4_ref[...], preferred_element_type=f32) + b4_ref[...]


# --------------------------------------------------------------------------
# Wrapper around pallas_call
# --------------------------------------------------------------------------

_VMEM = pl.BlockSpec(memory_space=pltpu.MemorySpace.VMEM)


def stack_lstm_forward(params, text, features):
    """text: (T, B) int32 token ids; features: (B, input_unit_num) float32."""
    T, B = text.shape
    C = params["w4"].shape[-1]

    # Embedding lookup (XLA glue; table stays in HBM, not loaded into VMEM).
    emb = jnp.take(params["embedding"], text, axis=0)          # (T, B, E)
    x_flat = emb.reshape(T * B, emb.shape[-1])                 # (T*B, E), contiguous

    return pl.pallas_call(
        _stack_lstm_kernel,
        out_shape=jax.ShapeDtypeStruct((B, C), jnp.float32),
        in_specs=[_VMEM] * 16,
        out_specs=_VMEM,
    )(x_flat, features,
      params["wih_f"], params["whh_f"], params["b_f"],
      params["wih_b"], params["whh_b"], params["b_b"],
      params["w1"], params["b1"], params["w2"], params["b2"],
      params["w3"], params["b3"], params["w4"], params["b4"])


# --------------------------------------------------------------------------
# Deterministic parameter init + pure-JAX reference for verification
# --------------------------------------------------------------------------

def init_params(key, vocab, E, H, F, U, C):
    ks = jax.random.split(key, 16)
    u = lambda k, shape, s: jax.random.uniform(k, shape, jnp.float32, -s, s)
    sH = 1.0 / float(H) ** 0.5
    s1 = 1.0 / float(2 * H + F) ** 0.5
    sU = 1.0 / float(U) ** 0.5
    return {
        "embedding": jax.random.normal(ks[0], (vocab, E), jnp.float32),
        # forward direction, gates fused on last dim in PyTorch order (i, f, g, o)
        "wih_f": u(ks[1], (E, 4 * H), sH),
        "whh_f": u(ks[2], (H, 4 * H), sH),
        "b_f":   u(ks[3], (1, 4 * H), sH),      # = b_ih + b_hh when porting real weights
        # backward direction
        "wih_b": u(ks[4], (E, 4 * H), sH),
        "whh_b": u(ks[5], (H, 4 * H), sH),
        "b_b":   u(ks[6], (1, 4 * H), sH),
        # MLP head: fc1 (2H+F -> U), fc2/fc3 (U -> U), fc4 (U -> C)
        "w1": u(ks[7],  (2 * H + F, U), s1),
        "b1": u(ks[8],  (1, U), s1),
        "w2": u(ks[9],  (U, U), sU),
        "b2": u(ks[10], (1, U), sU),
        "w3": u(ks[11], (U, U), sU),
        "b3": u(ks[12], (1, U), sU),
        "w4": u(ks[13], (U, C), sU),
        "b4": u(ks[14], (1, C), sU),
    }


def reference_forward(params, text, features):
    emb = jnp.take(params["embedding"], text, axis=0)
    H = params["whh_f"].shape[0]

    def run_dir(x, wih, whh, b):
        B = x.shape[1]

        def step(carry, x_t):
            h, c = carry
            gates = x_t @ wih + h @ whh + b
            i = jax.nn.sigmoid(gates[:, :H])
            f = jax.nn.sigmoid(gates[:, H:2 * H])
            g = jnp.tanh(gates[:, 2 * H:3 * H])
            o = jax.nn.sigmoid(gates[:, 3 * H:])
            c = f * c + i * g
            h = o * jnp.tanh(c)
            return (h, c), None

        (h, _), _ = lax.scan(step, (jnp.zeros((B, H)), jnp.zeros((B, H))), x)
        return h

    h_f = run_dir(emb, params["wih_f"], params["whh_f"], params["b_f"])
    h_b = run_dir(emb[::-1], params["wih_b"], params["whh_b"], params["b_b"])
    cf = jnp.concatenate([h_f, h_b, features], axis=1)
    o1 = jnp.tanh(cf @ params["w1"] + params["b1"])
    o2 = jnp.tanh(o1 @ params["w2"] + params["b2"])
    o3 = jnp.tanh(o2 @ params["w3"] + params["b3"])
    return o3 @ params["w4"] + params["b4"]


# --------------------------------------------------------------------------

if __name__ == "__main__":
    T, B = 8, 4            # seq_len, batch
    vocab, E = 32, 32      # len(concat_embeddings), embedding_dim
    H = 32                 # hidden_size      (4H = 128 -> one full vreg of gates)
    F = 16                 # input_unit_num (extra features)
    U = 64                 # unit_num
    C = 3                  # num_class

    key = jax.random.PRNGKey(0)
    k_params, k_text, k_feat = jax.random.split(key, 3)

    params = init_params(k_params, vocab, E, H, F, U, C)
    text = jax.random.randint(k_text, (T, B), 0, vocab, dtype=jnp.int32)
    features = jax.random.normal(k_feat, (B, F), jnp.float32)

    out = jax.jit(stack_lstm_forward)(params, text, features)
    out = jax.block_until_ready(out)

    ref = reference_forward(params, text, features)
    assert out.shape == (B, C)
    assert jnp.allclose(out, ref, rtol=1e-4, atol=1e-4), "mismatch vs reference"

    print("KERNEL_OK")
</pallas_src>

<mosaic_0001>
module attributes {stable_mosaic.version = 11 : i64} {
  func.func @_stack_lstm_kernel(%arg0: memref<32x32xf32, #tpu.memory_space<vmem>>, %arg1: memref<4x16xf32, #tpu.memory_space<vmem>>, %arg2: memref<32x128xf32, #tpu.memory_space<vmem>>, %arg3: memref<32x128xf32, #tpu.memory_space<vmem>>, %arg4: memref<1x128xf32, #tpu.memory_space<vmem>>, %arg5: memref<32x128xf32, #tpu.memory_space<vmem>>, %arg6: memref<32x128xf32, #tpu.memory_space<vmem>>, %arg7: memref<1x128xf32, #tpu.memory_space<vmem>>, %arg8: memref<80x64xf32, #tpu.memory_space<vmem>>, %arg9: memref<1x64xf32, #tpu.memory_space<vmem>>, %arg10: memref<64x64xf32, #tpu.memory_space<vmem>>, %arg11: memref<1x64xf32, #tpu.memory_space<vmem>>, %arg12: memref<64x64xf32, #tpu.memory_space<vmem>>, %arg13: memref<1x64xf32, #tpu.memory_space<vmem>>, %arg14: memref<64x3xf32, #tpu.memory_space<vmem>>, %arg15: memref<1x3xf32, #tpu.memory_space<vmem>>, %arg16: memref<4x3xf32, #tpu.memory_space<vmem>>) attributes {dimension_semantics = [], scalar_prefetch = 0 : i64, scratch_operands = 0 : i64, tpu.core_type = #tpu.core_type<tc>} {
    %c0 = arith.constant 0 : index
    %c0_0 = arith.constant 0 : index
    %0 = vector.load %arg0[%c0, %c0_0] : memref<32x32xf32, #tpu.memory_space<vmem>>, vector<32x32xf32>
    %c0_1 = arith.constant 0 : index
    %c0_2 = arith.constant 0 : index
    %1 = vector.load %arg2[%c0_1, %c0_2] : memref<32x128xf32, #tpu.memory_space<vmem>>, vector<32x128xf32>
    %cst = arith.constant dense<0.000000e+00> : vector<32x128xf32>
    %2 = tpu.matmul %0, %1, %cst {dimension_numbers = #tpu.dot_dimension_numbers<[1], [0], [0], [1], [0, 0, 1, 1], [], []>} : vector<32x32xf32>, vector<32x128xf32>, vector<32x128xf32> -> vector<32x128xf32>
    %c0_3 = arith.constant 0 : index
    %c0_4 = arith.constant 0 : index
    %3 = vector.load %arg4[%c0_3, %c0_4] : memref<1x128xf32, #tpu.memory_space<vmem>>, vector<1x128xf32>
    %4 = vector.broadcast %3 : vector<1x128xf32> to vector<32x128xf32>
    %5 = arith.addf %2, %4 : vector<32x128xf32>
    %c0_5 = arith.constant 0 : index
    %c0_6 = arith.constant 0 : index
    %6 = vector.load %arg5[%c0_5, %c0_6] : memref<32x128xf32, #tpu.memory_space<vmem>>, vector<32x128xf32>
    %cst_7 = arith.constant dense<0.000000e+00> : vector<32x128xf32>
    %7 = tpu.matmul %0, %6, %cst_7 {dimension_numbers = #tpu.dot_dimension_numbers<[1], [0], [0], [1], [0, 0, 1, 1], [], []>} : vector<32x32xf32>, vector<32x128xf32>, vector<32x128xf32> -> vector<32x128xf32>
    %c0_8 = arith.constant 0 : index
    %c0_9 = arith.constant 0 : index
    %8 = vector.load %arg7[%c0_8, %c0_9] : memref<1x128xf32, #tpu.memory_space<vmem>>, vector<1x128xf32>
    %9 = vector.broadcast %8 : vector<1x128xf32> to vector<32x128xf32>
    %10 = arith.addf %7, %9 : vector<32x128xf32>
    %c0_10 = arith.constant 0 : index
    %c0_11 = arith.constant 0 : index
    %11 = vector.load %arg3[%c0_10, %c0_11] : memref<32x128xf32, #tpu.memory_space<vmem>>, vector<32x128xf32>
    %c0_12 = arith.constant 0 : index
    %c0_13 = arith.constant 0 : index
    %12 = vector.load %arg6[%c0_12, %c0_13] : memref<32x128xf32, #tpu.memory_space<vmem>>, vector<32x128xf32>
    %cst_14 = arith.constant 0.000000e+00 : f32
    %13 = vector.broadcast %cst_14 : f32 to vector<4x32xf32>
    %14 = vector.extract_strided_slice %5 {offsets = [0, 0], sizes = [4, 128], strides = [1, 1]} : vector<32x128xf32> to vector<4x128xf32>
    %cst_15 = arith.constant dense<0.000000e+00> : vector<4x128xf32>
    %15 = tpu.matmul %13, %11, %cst_15 {dimension_numbers = #tpu.dot_dimension_numbers<[1], [0], [0], [1], [0, 0, 1, 1], [], []>} : vector<4x32xf32>, vector<32x128xf32>, vector<4x128xf32> -> vector<4x128xf32>
    %16 = arith.addf %14, %15 : vector<4x128xf32>
    %17 = vector.extract_strided_slice %16 {offsets = [0, 0], sizes = [4, 32], strides = [1, 1]} : vector<4x128xf32> to vector<4x32xf32>
    %18 = arith.negf %17 : vector<4x32xf32>
    %19 = math.exp %18 : vector<4x32xf32>
    %cst_16 = arith.constant 1.000000e+00 : f32
    %20 = vector.broadcast %cst_16 : f32 to vector<4x32xf32>
    %21 = arith.addf %20, %19 : vector<4x32xf32>
    %22 = arith.divf %20, %21 : vector<4x32xf32>
    %23 = vector.extract_strided_slice %16 {offsets = [0, 32], sizes = [4, 32], strides = [1, 1]} : vector<4x128xf32> to vector<4x32xf32>
    %24 = arith.negf %23 : vector<4x32xf32>
    %25 = math.exp %24 : vector<4x32xf32>
    %cst_17 = arith.constant 1.000000e+00 : f32
    %26 = vector.broadcast %cst_17 : f32 to vector<4x32xf32>
    %27 = arith.addf %26, %25 : vector<4x32xf32>
    %28 = arith.divf %26, %27 : vector<4x32xf32>
    %29 = vector.extract_strided_slice %16 {offsets = [0, 64], sizes = [4, 32], strides = [1, 1]} : vector<4x128xf32> to vector<4x32xf32>
    %30 = math.tanh %29 : vector<4x32xf32>
    %31 = vector.extract_strided_slice %16 {offsets = [0, 96], sizes = [4, 32], strides = [1, 1]} : vector<4x128xf32> to vector<4x32xf32>
    %32 = arith.negf %31 : vector<4x32xf32>
    %33 = math.exp %32 : vector<4x32xf32>
    %cst_18 = arith.constant 1.000000e+00 : f32
    %34 = vector.broadcast %cst_18 : f32 to vector<4x32xf32>
    %35 = arith.addf %34, %33 : vector<4x32xf32>
    %36 = arith.divf %34, %35 : vector<4x32xf32>
    %37 = arith.mulf %28, %13 : vector<4x32xf32>
    %38 = arith.mulf %22, %30 : vector<4x32xf32>
    %39 = arith.addf %37, %38 : vector<4x32xf32>
    %40 = math.tanh %39 : vector<4x32xf32>
    %41 = arith.mulf %36, %40 : vector<4x32xf32>
    %42 = vector.extract_strided_slice %10 {offsets = [28, 0], sizes = [4, 128], strides = [1, 1]} : vector<32x128xf32> to vector<4x128xf32>
    %cst_19 = arith.constant dense<0.000000e+00> : vector<4x128xf32>
    %43 = tpu.matmul %13, %12, %cst_19 {dimension_numbers = #tpu.dot_dimension_numbers<[1], [0], [0], [1], [0, 0, 1, 1], [], []>} : vector<4x32xf32>, vector<32x128xf32>, vector<4x128xf32> -> vector<4x128xf32>
    %44 = arith.addf %42, %43 : vector<4x128xf32>
    %45 = vector.extract_strided_slice %44 {offsets = [0, 0], sizes = [4, 32], strides = [1, 1]} : vector<4x128xf32> to vector<4x32xf32>
    %46 = arith.negf %45 : vector<4x32xf32>
    %47 = math.exp %46 : vector<4x32xf32>
    %cst_20 = arith.constant 1.000000e+00 : f32
    %48 = vector.broadcast %cst_20 : f32 to vector<4x32xf32>
    %49 = arith.addf %48, %47 : vector<4x32xf32>
    %50 = arith.divf %48, %49 : vector<4x32xf32>
    %51 = vector.extract_strided_slice %44 {offsets = [0, 32], sizes = [4, 32], strides = [1, 1]} : vector<4x128xf32> to vector<4x32xf32>
    %52 = arith.negf %51 : vector<4x32xf32>
    %53 = math.exp %52 : vector<4x32xf32>
    %cst_21 = arith.constant 1.000000e+00 : f32
    %54 = vector.broadcast %cst_21 : f32 to vector<4x32xf32>
    %55 = arith.addf %54, %53 : vector<4x32xf32>
    %56 = arith.divf %54, %55 : vector<4x32xf32>
    %57 = vector.extract_strided_slice %44 {offsets = [0, 64], sizes = [4, 32], strides = [1, 1]} : vector<4x128xf32> to vector<4x32xf32>
    %58 = math.tanh %57 : vector<4x32xf32>
    %59 = vector.extract_strided_slice %44 {offsets = [0, 96], sizes = [4, 32], strides = [1, 1]} : vector<4x128xf32> to vector<4x32xf32>
    %60 = arith.negf %59 : vector<4x32xf32>
    %61 = math.exp %60 : vector<4x32xf32>
    %cst_22 = arith.constant 1.000000e+00 : f32
    %62 = vector.broadcast %cst_22 : f32 to vector<4x32xf32>
    %63 = arith.addf %62, %61 : vector<4x32xf32>
    %64 = arith.divf %62, %63 : vector<4x32xf32>
    %65 = arith.mulf %56, %13 : vector<4x32xf32>
    %66 = arith.mulf %50, %58 : vector<4x32xf32>
    %67 = arith.addf %65, %66 : vector<4x32xf32>
    %68 = math.tanh %67 : vector<4x32xf32>
    %69 = arith.mulf %64, %68 : vector<4x32xf32>
    %70 = vector.extract_strided_slice %5 {offsets = [4, 0], sizes = [4, 128], strides = [1, 1]} : vector<32x128xf32> to vector<4x128xf32>
    %cst_23 = arith.constant dense<0.000000e+00> : vector<4x128xf32>
    %71 = tpu.matmul %41, %11, %cst_23 {dimension_numbers = #tpu.dot_dimension_numbers<[1], [0], [0], [1], [0, 0, 1, 1], [], []>} : vector<4x32xf32>, vector<32x128xf32>, vector<4x128xf32> -> vector<4x128xf32>
    %72 = arith.addf %70, %71 : vector<4x128xf32>
    %73 = vector.extract_strided_slice %72 {offsets = [0, 0], sizes = [4, 32], strides = [1, 1]} : vector<4x128xf32> to vector<4x32xf32>
    %74 = arith.negf %73 : vector<4x32xf32>
    %75 = math.exp %74 : vector<4x32xf32>
    %cst_24 = arith.constant 1.000000e+00 : f32
    %76 = vector.broadcast %cst_24 : f32 to vector<4x32xf32>
    %77 = arith.addf %76, %75 : vector<4x32xf32>
    %78 = arith.divf %76, %77 : vector<4x32xf32>
    %79 = vector.extract_strided_slice %72 {offsets = [0, 32], sizes = [4, 32], strides = [1, 1]} : vector<4x128xf32> to vector<4x32xf32>
    %80 = arith.negf %79 : vector<4x32xf32>
    %81 = math.exp %80 : vector<4x32xf32>
    %cst_25 = arith.constant 1.000000e+00 : f32
    %82 = vector.broadcast %cst_25 : f32 to vector<4x32xf32>
    %83 = arith.addf %82, %81 : vector<4x32xf32>
    %84 = arith.divf %82, %83 : vector<4x32xf32>
    %85 = vector.extract_strided_slice %72 {offsets = [0, 64], sizes = [4, 32], strides = [1, 1]} : vector<4x128xf32> to vector<4x32xf32>
    %86 = math.tanh %85 : vector<4x32xf32>
    %87 = vector.extract_strided_slice %72 {offsets = [0, 96], sizes = [4, 32], strides = [1, 1]} : vector<4x128xf32> to vector<4x32xf32>
    %88 = arith.negf %87 : vector<4x32xf32>
    %89 = math.exp %88 : vector<4x32xf32>
    %cst_26 = arith.constant 1.000000e+00 : f32
    %90 = vector.broadcast %cst_26 : f32 to vector<4x32xf32>
    %91 = arith.addf %90, %89 : vector<4x32xf32>
    %92 = arith.divf %90, %91 : vector<4x32xf32>
    %93 = arith.mulf %84, %39 : vector<4x32xf32>
    %94 = arith.mulf %78, %86 : vector<4x32xf32>
    %95 = arith.addf %93, %94 : vector<4x32xf32>
    %96 = math.tanh %95 : vector<4x32xf32>
    %97 = arith.mulf %92, %96 : vector<4x32xf32>
    %98 = vector.extract_strided_slice %10 {offsets = [24, 0], sizes = [4, 128], strides = [1, 1]} : vector<32x128xf32> to vector<4x128xf32>
    %cst_27 = arith.constant dense<0.000000e+00> : vector<4x128xf32>
    %99 = tpu.matmul %69, %12, %cst_27 {dimension_numbers = #tpu.dot_dimension_numbers<[1], [0], [0], [1], [0, 0, 1, 1], [], []>} : vector<4x32xf32>, vector<32x128xf32>, vector<4x128xf32> -> vector<4x128xf32>
    %100 = arith.addf %98, %99 : vector<4x128xf32>
    %101 = vector.extract_strided_slice %100 {offsets = [0, 0], sizes = [4, 32], strides = [1, 1]} : vector<4x128xf32> to vector<4x32xf32>
    %102 = arith.negf %101 : vector<4x32xf32>
    %103 = math.exp %102 : vector<4x32xf32>
    %cst_28 = arith.constant 1.000000e+00 : f32
    %104 = vector.broadcast %cst_28 : f32 to vector<4x32xf32>
    %105 = arith.addf %104, %103 : vector<4x32xf32>
    %106 = arith.divf %104, %105 : vector<4x32xf32>
    %107 = vector.extract_strided_slice %100 {offsets = [0, 32], sizes = [4, 32], strides = [1, 1]} : vector<4x128xf32> to vector<4x32xf32>
    %108 = arith.negf %107 : vector<4x32xf32>
    %109 = math.exp %108 : vector<4x32xf32>
    %cst_29 = arith.constant 1.000000e+00 : f32
    %110 = vector.broadcast %cst_29 : f32 to vector<4x32xf32>
    %111 = arith.addf %110, %109 : vector<4x32xf32>
    %112 = arith.divf %110, %111 : vector<4x32xf32>
    %113 = vector.extract_strided_slice %100 {offsets = [0, 64], sizes = [4, 32], strides = [1, 1]} : vector<4x128xf32> to vector<4x32xf32>
    %114 = math.tanh %113 : vector<4x32xf32>
    %115 = vector.extract_strided_slice %100 {offsets = [0, 96], sizes = [4, 32], strides = [1, 1]} : vector<4x128xf32> to vector<4x32xf32>
    %116 = arith.negf %115 : vector<4x32xf32>
    %117 = math.exp %116 : vector<4x32xf32>
    %cst_30 = arith.constant 1.000000e+00 : f32
    %118 = vector.broadcast %cst_30 : f32 to vector<4x32xf32>
    %119 = arith.addf %118, %117 : vector<4x32xf32>
    %120 = arith.divf %118, %119 : vector<4x32xf32>
    %121 = arith.mulf %112, %67 : vector<4x32xf32>
    %122 = arith.mulf %106, %114 : vector<4x32xf32>
    %123 = arith.addf %121, %122 : vector<4x32xf32>
    %124 = math.tanh %123 : vector<4x32xf32>
    %125 = arith.mulf %120, %124 : vector<4x32xf32>
    %126 = vector.extract_strided_slice %5 {offsets = [8, 0], sizes = [4, 128], strides = [1, 1]} : vector<32x128xf32> to vector<4x128xf32>
    %cst_31 = arith.constant dense<0.000000e+00> : vector<4x128xf32>
    %127 = tpu.matmul %97, %11, %cst_31 {dimension_numbers = #tpu.dot_dimension_numbers<[1], [0], [0], [1], [0, 0, 1, 1], [], []>} : vector<4x32xf32>, vector<32x128xf32>, vector<4x128xf32> -> vector<4x128xf32>
    %128 = arith.addf %126, %127 : vector<4x128xf32>
    %129 = vector.extract_strided_slice %128 {offsets = [0, 0], sizes = [4, 32], strides = [1, 1]} : vector<4x128xf32> to vector<4x32xf32>
    %130 = arith.negf %129 : vector<4x32xf32>
    %131 = math.exp %130 : vector<4x32xf32>
    %cst_32 = arith.constant 1.000000e+00 : f32
    %132 = vector.broadcast %cst_32 : f32 to vector<4x32xf32>
    %133 = arith.addf %132, %131 : vector<4x32xf32>
    %134 = arith.divf %132, %133 : vector<4x32xf32>
    %135 = vector.extract_strided_slice %128 {offsets = [0, 32], sizes = [4, 32], strides = [1, 1]} : vector<4x128xf32> to vector<4x32xf32>
    %136 = arith.negf %135 : vector<4x32xf32>
    %137 = math.exp %136 : vector<4x32xf32>
    %cst_33 = arith.constant 1.000000e+00 : f32
    %138 = vector.broadcast %cst_33 : f32 to vector<4x32xf32>
    %139 = arith.addf %138, %137 : vector<4x32xf32>
    %140 = arith.divf %138, %139 : vector<4x32xf32>
    %141 = vector.extract_strided_slice %128 {offsets = [0, 64], sizes = [4, 32], strides = [1, 1]} : vector<4x128xf32> to vector<4x32xf32>
    %142 = math.tanh %141 : vector<4x32xf32>
    %143 = vector.extract_strided_slice %128 {offsets = [0, 96], sizes = [4, 32], strides = [1, 1]} : vector<4x128xf32> to vector<4x32xf32>
    %144 = arith.negf %143 : vector<4x32xf32>
    %145 = math.exp %144 : vector<4x32xf32>
    %cst_34 = arith.constant 1.000000e+00 : f32
    %146 = vector.broadcast %cst_34 : f32 to vector<4x32xf32>
    %147 = arith.addf %146, %145 : vector<4x32xf32>
    %148 = arith.divf %146, %147 : vector<4x32xf32>
    %149 = arith.mulf %140, %95 : vector<4x32xf32>
    %150 = arith.mulf %134, %142 : vector<4x32xf32>
    %151 = arith.addf %149, %150 : vector<4x32xf32>
    %152 = math.tanh %151 : vector<4x32xf32>
    %153 = arith.mulf %148, %152 : vector<4x32xf32>
    %154 = vector.extract_strided_slice %10 {offsets = [20, 0], sizes = [4, 128], strides = [1, 1]} : vector<32x128xf32> to vector<4x128xf32>
    %cst_35 = arith.constant dense<0.000000e+00> : vector<4x128xf32>
    %155 = tpu.matmul %125, %12, %cst_35 {dimension_numbers = #tpu.dot_dimension_numbers<[1], [0], [0], [1], [0, 0, 1, 1], [], []>} : vector<4x32xf32>, vector<32x128xf32>, vector<4x128xf32> -> vector<4x128xf32>
    %156 = arith.addf %154, %155 : vector<4x128xf32>
    %157 = vector.extract_strided_slice %156 {offsets = [0, 0], sizes = [4, 32], strides = [1, 1]} : vector<4x128xf32> to vector<4x32xf32>
    %158 = arith.negf %157 : vector<4x32xf32>
    %159 = math.exp %158 : vector<4x32xf32>
    %cst_36 = arith.constant 1.000000e+00 : f32
    %160 = vector.broadcast %cst_36 : f32 to vector<4x32xf32>
    %161 = arith.addf %160, %159 : vector<4x32xf32>
    %162 = arith.divf %160, %161 : vector<4x32xf32>
    %163 = vector.extract_strided_slice %156 {offsets = [0, 32], sizes = [4, 32], strides = [1, 1]} : vector<4x128xf32> to vector<4x32xf32>
    %164 = arith.negf %163 : vector<4x32xf32>
    %165 = math.exp %164 : vector<4x32xf32>
    %cst_37 = arith.constant 1.000000e+00 : f32
    %166 = vector.broadcast %cst_37 : f32 to vector<4x32xf32>
    %167 = arith.addf %166, %165 : vector<4x32xf32>
    %168 = arith.divf %166, %167 : vector<4x32xf32>
    %169 = vector.extract_strided_slice %156 {offsets = [0, 64], sizes = [4, 32], strides = [1, 1]} : vector<4x128xf32> to vector<4x32xf32>
    %170 = math.tanh %169 : vector<4x32xf32>
    %171 = vector.extract_strided_slice %156 {offsets = [0, 96], sizes = [4, 32], strides = [1, 1]} : vector<4x128xf32> to vector<4x32xf32>
    %172 = arith.negf %171 : vector<4x32xf32>
    %173 = math.exp %172 : vector<4x32xf32>
    %cst_38 = arith.constant 1.000000e+00 : f32
    %174 = vector.broadcast %cst_38 : f32 to vector<4x32xf32>
    %175 = arith.addf %174, %173 : vector<4x32xf32>
    %176 = arith.divf %174, %175 : vector<4x32xf32>
    %177 = arith.mulf %168, %123 : vector<4x32xf32>
    %178 = arith.mulf %162, %170 : vector<4x32xf32>
    %179 = arith.addf %177, %178 : vector<4x32xf32>
    %180 = math.tanh %179 : vector<4x32xf32>
    %181 = arith.mulf %176, %180 : vector<4x32xf32>
    %182 = vector.extract_strided_slice %5 {offsets = [12, 0], sizes = [4, 128], strides = [1, 1]} : vector<32x128xf32> to vector<4x128xf32>
    %cst_39 = arith.constant dense<0.000000e+00> : vector<4x128xf32>
    %183 = tpu.matmul %153, %11, %cst_39 {dimension_numbers = #tpu.dot_dimension_numbers<[1], [0], [0], [1], [0, 0, 1, 1], [], []>} : vector<4x32xf32>, vector<32x128xf32>, vector<4x128xf32> -> vector<4x128xf32>
    %184 = arith.addf %182, %183 : vector<4x128xf32>
    %185 = vector.extract_strided_slice %184 {offsets = [0, 0], sizes = [4, 32], strides = [1, 1]} : vector<4x128xf32> to vector<4x32xf32>
    %186 = arith.negf %185 : vector<4x32xf32>
    %187 = math.exp %186 : vector<4x32xf32>
    %cst_40 = arith.constant 1.000000e+00 : f32
    %188 = vector.broadcast %cst_40 : f32 to vector<4x32xf32>
    %189 = arith.addf %188, %187 : vector<4x32xf32>
    %190 = arith.divf %188, %189 : vector<4x32xf32>
    %191 = vector.extract_strided_slice %184 {offsets = [0, 32], sizes = [4, 32], strides = [1, 1]} : vector<4x128xf32> to vector<4x32xf32>
    %192 = arith.negf %191 : vector<4x32xf32>
    %193 = math.exp %192 : vector<4x32xf32>
    %cst_41 = arith.constant 1.000000e+00 : f32
    %194 = vector.broadcast %cst_41 : f32 to vector<4x32xf32>
    %195 = arith.addf %194, %193 : vector<4x32xf32>
    %196 = arith.divf %194, %195 : vector<4x32xf32>
    %197 = vector.extract_strided_slice %184 {offsets = [0, 64], sizes = [4, 32], strides = [1, 1]} : vector<4x128xf32> to vector<4x32xf32>
    %198 = math.tanh %197 : vector<4x32xf32>
    %199 = vector.extract_strided_slice %184 {offsets = [0, 96], sizes = [4, 32], strides = [1, 1]} : vector<4x128xf32> to vector<4x32xf32>
    %200 = arith.negf %199 : vector<4x32xf32>
    %201 = math.exp %200 : vector<4x32xf32>
    %cst_42 = arith.constant 1.000000e+00 : f32
    %202 = vector.broadcast %cst_42 : f32 to vector<4x32xf32>
    %203 = arith.addf %202, %201 : vector<4x32xf32>
    %204 = arith.divf %202, %203 : vector<4x32xf32>
    %205 = arith.mulf %196, %151 : vector<4x32xf32>
    %206 = arith.mulf %190, %198 : vector<4x32xf32>
    %207 = arith.addf %205, %206 : vector<4x32xf32>
    %208 = math.tanh %207 : vector<4x32xf32>
    %209 = arith.mulf %204, %208 : vector<4x32xf32>
    %210 = vector.extract_strided_slice %10 {offsets = [16, 0], sizes = [4, 128], strides = [1, 1]} : vector<32x128xf32> to vector<4x128xf32>
    %cst_43 = arith.constant dense<0.000000e+00> : vector<4x128xf32>
    %211 = tpu.matmul %181, %12, %cst_43 {dimension_numbers = #tpu.dot_dimension_numbers<[1], [0], [0], [1], [0, 0, 1, 1], [], []>} : vector<4x32xf32>, vector<32x128xf32>, vector<4x128xf32> -> vector<4x128xf32>
    %212 = arith.addf %210, %211 : vector<4x128xf32>
    %213 = vector.extract_strided_slice %212 {offsets = [0, 0], sizes = [4, 32], strides = [1, 1]} : vector<4x128xf32> to vector<4x32xf32>
    %214 = arith.negf %213 : vector<4x32xf32>
    %215 = math.exp %214 : vector<4x32xf32>
    %cst_44 = arith.constant 1.000000e+00 : f32
    %216 = vector.broadcast %cst_44 : f32 to vector<4x32xf32>
    %217 = arith.addf %216, %215 : vector<4x32xf32>
    %218 = arith.divf %216, %217 : vector<4x32xf32>
    %219 = vector.extract_strided_slice %212 {offsets = [0, 32], sizes = [4, 32], strides = [1, 1]} : vector<4x128xf32> to vector<4x32xf32>
    %220 = arith.negf %219 : vector<4x32xf32>
    %221 = math.exp %220 : vector<4x32xf32>
    %cst_45 = arith.constant 1.000000e+00 : f32
    %222 = vector.broadcast %cst_45 : f32 to vector<4x32xf32>
    %223 = arith.addf %222, %221 : vector<4x32xf32>
    %224 = arith.divf %222, %223 : vector<4x32xf32>
    %225 = vector.extract_strided_slice %212 {offsets = [0, 64], sizes = [4, 32], strides = [1, 1]} : vector<4x128xf32> to vector<4x32xf32>
    %226 = math.tanh %225 : vector<4x32xf32>
    %227 = vector.extract_strided_slice %212 {offsets = [0, 96], sizes = [4, 32], strides = [1, 1]} : vector<4x128xf32> to vector<4x32xf32>
    %228 = arith.negf %227 : vector<4x32xf32>
    %229 = math.exp %228 : vector<4x32xf32>
    %cst_46 = arith.constant 1.000000e+00 : f32
    %230 = vector.broadcast %cst_46 : f32 to vector<4x32xf32>
    %231 = arith.addf %230, %229 : vector<4x32xf32>
    %232 = arith.divf %230, %231 : vector<4x32xf32>
    %233 = arith.mulf %224, %179 : vector<4x32xf32>
    %234 = arith.mulf %218, %226 : vector<4x32xf32>
    %235 = arith.addf %233, %234 : vector<4x32xf32>
    %236 = math.tanh %235 : vector<4x32xf32>
    %237 = arith.mulf %232, %236 : vector<4x32xf32>
    %238 = vector.extract_strided_slice %5 {offsets = [16, 0], sizes = [4, 128], strides = [1, 1]} : vector<32x128xf32> to vector<4x128xf32>
    %cst_47 = arith.constant dense<0.000000e+00> : vector<4x128xf32>
    %239 = tpu.matmul %209, %11, %cst_47 {dimension_numbers = #tpu.dot_dimension_numbers<[1], [0], [0], [1], [0, 0, 1, 1], [], []>} : vector<4x32xf32>, vector<32x128xf32>, vector<4x128xf32> -> vector<4x128xf32>
    %240 = arith.addf %238, %239 : vector<4x128xf32>
    %241 = vector.extract_strided_slice %240 {offsets = [0, 0], sizes = [4, 32], strides = [1, 1]} : vector<4x128xf32> to vector<4x32xf32>
    %242 = arith.negf %241 : vector<4x32xf32>
    %243 = math.exp %242 : vector<4x32xf32>
    %cst_48 = arith.constant 1.000000e+00 : f32
    %244 = vector.broadcast %cst_48 : f32 to vector<4x32xf32>
    %245 = arith.addf %244, %243 : vector<4x32xf32>
    %246 = arith.divf %244, %245 : vector<4x32xf32>
    %247 = vector.extract_strided_slice %240 {offsets = [0, 32], sizes = [4, 32], strides = [1, 1]} : vector<4x128xf32> to vector<4x32xf32>
    %248 = arith.negf %247 : vector<4x32xf32>
    %249 = math.exp %248 : vector<4x32xf32>
    %cst_49 = arith.constant 1.000000e+00 : f32
    %250 = vector.broadcast %cst_49 : f32 to vector<4x32xf32>
    %251 = arith.addf %250, %249 : vector<4x32xf32>
    %252 = arith.divf %250, %251 : vector<4x32xf32>
    %253 = vector.extract_strided_slice %240 {offsets = [0, 64], sizes = [4, 32], strides = [1, 1]} : vector<4x128xf32> to vector<4x32xf32>
    %254 = math.tanh %253 : vector<4x32xf32>
    %255 = vector.extract_strided_slice %240 {offsets = [0, 96], sizes = [4, 32], strides = [1, 1]} : vector<4x128xf32> to vector<4x32xf32>
    %256 = arith.negf %255 : vector<4x32xf32>
    %257 = math.exp %256 : vector<4x32xf32>
    %cst_50 = arith.constant 1.000000e+00 : f32
    %258 = vector.broadcast %cst_50 : f32 to vector<4x32xf32>
    %259 = arith.addf %258, %257 : vector<4x32xf32>
    %260 = arith.divf %258, %259 : vector<4x32xf32>
    %261 = arith.mulf %252, %207 : vector<4x32xf32>
    %262 = arith.mulf %246, %254 : vector<4x32xf32>
    %263 = arith.addf %261, %262 : vector<4x32xf32>
    %264 = math.tanh %263 : vector<4x32xf32>
    %265 = arith.mulf %260, %264 : vector<4x32xf32>
    %266 = vector.extract_strided_slice %10 {offsets = [12, 0], sizes = [4, 128], strides = [1, 1]} : vector<32x128xf32> to vector<4x128xf32>
    %cst_51 = arith.constant dense<0.000000e+00> : vector<4x128xf32>
    %267 = tpu.matmul %237, %12, %cst_51 {dimension_numbers = #tpu.dot_dimension_numbers<[1], [0], [0], [1], [0, 0, 1, 1], [], []>} : vector<4x32xf32>, vector<32x128xf32>, vector<4x128xf32> -> vector<4x128xf32>
    %268 = arith.addf %266, %267 : vector<4x128xf32>
    %269 = vector.extract_strided_slice %268 {offsets = [0, 0], sizes = [4, 32], strides = [1, 1]} : vector<4x128xf32> to vector<4x32xf32>
    %270 = arith.negf %269 : vector<4x32xf32>
    %271 = math.exp %270 : vector<4x32xf32>
    %cst_52 = arith.constant 1.000000e+00 : f32
    %272 = vector.broadcast %cst_52 : f32 to vector<4x32xf32>
    %273 = arith.addf %272, %271 : vector<4x32xf32>
    %274 = arith.divf %272, %273 : vector<4x32xf32>
    %275 = vector.extract_strided_slice %268 {offsets = [0, 32], sizes = [4, 32], strides = [1, 1]} : vector<4x128xf32> to vector<4x32xf32>
    %276 = arith.negf %275 : vector<4x32xf32>
    %277 = math.exp %276 : vector<4x32xf32>
    %cst_53 = arith.constant 1.000000e+00 : f32
    %278 = vector.broadcast %cst_53 : f32 to vector<4x32xf32>
    %279 = arith.addf %278, %277 : vector<4x32xf32>
    %280 = arith.divf %278, %279 : vector<4x32xf32>
    %281 = vector.extract_strided_slice %268 {offsets = [0, 64], sizes = [4, 32], strides = [1, 1]} : vector<4x128xf32> to vector<4x32xf32>
    %282 = math.tanh %281 : vector<4x32xf32>
    %283 = vector.extract_strided_slice %268 {offsets = [0, 96], sizes = [4, 32], strides = [1, 1]} : vector<4x128xf32> to vector<4x32xf32>
    %284 = arith.negf %283 : vector<4x32xf32>
    %285 = math.exp %284 : vector<4x32xf32>
    %cst_54 = arith.constant 1.000000e+00 : f32
    %286 = vector.broadcast %cst_54 : f32 to vector<4x32xf32>
    %287 = arith.addf %286, %285 : vector<4x32xf32>
    %288 = arith.divf %286, %287 : vector<4x32xf32>
    %289 = arith.mulf %280, %235 : vector<4x32xf32>
    %290 = arith.mulf %274, %282 : vector<4x32xf32>
    %291 = arith.addf %289, %290 : vector<4x32xf32>
    %292 = math.tanh %291 : vector<4x32xf32>
    %293 = arith.mulf %288, %292 : vector<4x32xf32>
    %294 = vector.extract_strided_slice %5 {offsets = [20, 0], sizes = [4, 128], strides = [1, 1]} : vector<32x128xf32> to vector<4x128xf32>
    %cst_55 = arith.constant dense<0.000000e+00> : vector<4x128xf32>
    %295 = tpu.matmul %265, %11, %cst_55 {dimension_numbers = #tpu.dot_dimension_numbers<[1], [0], [0], [1], [0, 0, 1, 1], [], []>} : vector<4x32xf32>, vector<32x128xf32>, vector<4x128xf32> -> vector<4x128xf32>
    %296 = arith.addf %294, %295 : vector<4x128xf32>
    %297 = vector.extract_strided_slice %296 {offsets = [0, 0], sizes = [4, 32], strides = [1, 1]} : vector<4x128xf32> to vector<4x32xf32>
    %298 = arith.negf %297 : vector<4x32xf32>
    %299 = math.exp %298 : vector<4x32xf32>
    %cst_56 = arith.constant 1.000000e+00 : f32
    %300 = vector.broadcast %cst_56 : f32 to vector<4x32xf32>
    %301 = arith.addf %300, %299 : vector<4x32xf32>
    %302 = arith.divf %300, %301 : vector<4x32xf32>
    %303 = vector.extract_strided_slice %296 {offsets = [0, 32], sizes = [4, 32], strides = [1, 1]} : vector<4x128xf32> to vector<4x32xf32>
    %304 = arith.negf %303 : vector<4x32xf32>
    %305 = math.exp %304 : vector<4x32xf32>
    %cst_57 = arith.constant 1.000000e+00 : f32
    %306 = vector.broadcast %cst_57 : f32 to vector<4x32xf32>
    %307 = arith.addf %306, %305 : vector<4x32xf32>
    %308 = arith.divf %306, %307 : vector<4x32xf32>
    %309 = vector.extract_strided_slice %296 {offsets = [0, 64], sizes = [4, 32], strides = [1, 1]} : vector<4x128xf32> to vector<4x32xf32>
    %310 = math.tanh %309 : vector<4x32xf32>
    %311 = vector.extract_strided_slice %296 {offsets = [0, 96], sizes = [4, 32], strides = [1, 1]} : vector<4x128xf32> to vector<4x32xf32>
    %312 = arith.negf %311 : vector<4x32xf32>
    %313 = math.exp %312 : vector<4x32xf32>
    %cst_58 = arith.constant 1.000000e+00 : f32
    %314 = vector.broadcast %cst_58 : f32 to vector<4x32xf32>
    %315 = arith.addf %314, %313 : vector<4x32xf32>
    %316 = arith.divf %314, %315 : vector<4x32xf32>
    %317 = arith.mulf %308, %263 : vector<4x32xf32>
    %318 = arith.mulf %302, %310 : vector<4x32xf32>
    %319 = arith.addf %317, %318 : vector<4x32xf32>
    %320 = math.tanh %319 : vector<4x32xf32>
    %321 = arith.mulf %316, %320 : vector<4x32xf32>
    %322 = vector.extract_strided_slice %10 {offsets = [8, 0], sizes = [4, 128], strides = [1, 1]} : vector<32x128xf32> to vector<4x128xf32>
    %cst_59 = arith.constant dense<0.000000e+00> : vector<4x128xf32>
    %323 = tpu.matmul %293, %12, %cst_59 {dimension_numbers = #tpu.dot_dimension_numbers<[1], [0], [0], [1], [0, 0, 1, 1], [], []>} : vector<4x32xf32>, vector<32x128xf32>, vector<4x128xf32> -> vector<4x128xf32>
    %324 = arith.addf %322, %323 : vector<4x128xf32>
    %325 = vector.extract_strided_slice %324 {offsets = [0, 0], sizes = [4, 32], strides = [1, 1]} : vector<4x128xf32> to vector<4x32xf32>
    %326 = arith.negf %325 : vector<4x32xf32>
    %327 = math.exp %326 : vector<4x32xf32>
    %cst_60 = arith.constant 1.000000e+00 : f32
    %328 = vector.broadcast %cst_60 : f32 to vector<4x32xf32>
    %329 = arith.addf %328, %327 : vector<4x32xf32>
    %330 = arith.divf %328, %329 : vector<4x32xf32>
    %331 = vector.extract_strided_slice %324 {offsets = [0, 32], sizes = [4, 32], strides = [1, 1]} : vector<4x128xf32> to vector<4x32xf32>
    %332 = arith.negf %331 : vector<4x32xf32>
    %333 = math.exp %332 : vector<4x32xf32>
    %cst_61 = arith.constant 1.000000e+00 : f32
    %334 = vector.broadcast %cst_61 : f32 to vector<4x32xf32>
    %335 = arith.addf %334, %333 : vector<4x32xf32>
    %336 = arith.divf %334, %335 : vector<4x32xf32>
    %337 = vector.extract_strided_slice %324 {offsets = [0, 64], sizes = [4, 32], strides = [1, 1]} : vector<4x128xf32> to vector<4x32xf32>
    %338 = math.tanh %337 : vector<4x32xf32>
    %339 = vector.extract_strided_slice %324 {offsets = [0, 96], sizes = [4, 32], strides = [1, 1]} : vector<4x128xf32> to vector<4x32xf32>
    %340 = arith.negf %339 : vector<4x32xf32>
    %341 = math.exp %340 : vector<4x32xf32>
    %cst_62 = arith.constant 1.000000e+00 : f32
    %342 = vector.broadcast %cst_62 : f32 to vector<4x32xf32>
    %343 = arith.addf %342, %341 : vector<4x32xf32>
    %344 = arith.divf %342, %343 : vector<4x32xf32>
    %345 = arith.mulf %336, %291 : vector<4x32xf32>
    %346 = arith.mulf %330, %338 : vector<4x32xf32>
    %347 = arith.addf %345, %346 : vector<4x32xf32>
    %348 = math.tanh %347 : vector<4x32xf32>
    %349 = arith.mulf %344, %348 : vector<4x32xf32>
    %350 = vector.extract_strided_slice %5 {offsets = [24, 0], sizes = [4, 128], strides = [1, 1]} : vector<32x128xf32> to vector<4x128xf32>
    %cst_63 = arith.constant dense<0.000000e+00> : vector<4x128xf32>
    %351 = tpu.matmul %321, %11, %cst_63 {dimension_numbers = #tpu.dot_dimension_numbers<[1], [0], [0], [1], [0, 0, 1, 1], [], []>} : vector<4x32xf32>, vector<32x128xf32>, vector<4x128xf32> -> vector<4x128xf32>
    %352 = arith.addf %350, %351 : vector<4x128xf32>
    %353 = vector.extract_strided_slice %352 {offsets = [0, 0], sizes = [4, 32], strides = [1, 1]} : vector<4x128xf32> to vector<4x32xf32>
    %354 = arith.negf %353 : vector<4x32xf32>
    %355 = math.exp %354 : vector<4x32xf32>
    %cst_64 = arith.constant 1.000000e+00 : f32
    %356 = vector.broadcast %cst_64 : f32 to vector<4x32xf32>
    %357 = arith.addf %356, %355 : vector<4x32xf32>
    %358 = arith.divf %356, %357 : vector<4x32xf32>
    %359 = vector.extract_strided_slice %352 {offsets = [0, 32], sizes = [4, 32], strides = [1, 1]} : vector<4x128xf32> to vector<4x32xf32>
    %360 = arith.negf %359 : vector<4x32xf32>
    %361 = math.exp %360 : vector<4x32xf32>
    %cst_65 = arith.constant 1.000000e+00 : f32
    %362 = vector.broadcast %cst_65 : f32 to vector<4x32xf32>
    %363 = arith.addf %362, %361 : vector<4x32xf32>
    %364 = arith.divf %362, %363 : vector<4x32xf32>
    %365 = vector.extract_strided_slice %352 {offsets = [0, 64], sizes = [4, 32], strides = [1, 1]} : vector<4x128xf32> to vector<4x32xf32>
    %366 = math.tanh %365 : vector<4x32xf32>
    %367 = vector.extract_strided_slice %352 {offsets = [0, 96], sizes = [4, 32], strides = [1, 1]} : vector<4x128xf32> to vector<4x32xf32>
    %368 = arith.negf %367 : vector<4x32xf32>
    %369 = math.exp %368 : vector<4x32xf32>
    %cst_66 = arith.constant 1.000000e+00 : f32
    %370 = vector.broadcast %cst_66 : f32 to vector<4x32xf32>
    %371 = arith.addf %370, %369 : vector<4x32xf32>
    %372 = arith.divf %370, %371 : vector<4x32xf32>
    %373 = arith.mulf %364, %319 : vector<4x32xf32>
    %374 = arith.mulf %358, %366 : vector<4x32xf32>
    %375 = arith.addf %373, %374 : vector<4x32xf32>
    %376 = math.tanh %375 : vector<4x32xf32>
    %377 = arith.mulf %372, %376 : vector<4x32xf32>
    %378 = vector.extract_strided_slice %10 {offsets = [4, 0], sizes = [4, 128], strides = [1, 1]} : vector<32x128xf32> to vector<4x128xf32>
    %cst_67 = arith.constant dense<0.000000e+00> : vector<4x128xf32>
    %379 = tpu.matmul %349, %12, %cst_67 {dimension_numbers = #tpu.dot_dimension_numbers<[1], [0], [0], [1], [0, 0, 1, 1], [], []>} : vector<4x32xf32>, vector<32x128xf32>, vector<4x128xf32> -> vector<4x128xf32>
    %380 = arith.addf %378, %379 : vector<4x128xf32>
    %381 = vector.extract_strided_slice %380 {offsets = [0, 0], sizes = [4, 32], strides = [1, 1]} : vector<4x128xf32> to vector<4x32xf32>
    %382 = arith.negf %381 : vector<4x32xf32>
    %383 = math.exp %382 : vector<4x32xf32>
    %cst_68 = arith.constant 1.000000e+00 : f32
    %384 = vector.broadcast %cst_68 : f32 to vector<4x32xf32>
    %385 = arith.addf %384, %383 : vector<4x32xf32>
    %386 = arith.divf %384, %385 : vector<4x32xf32>
    %387 = vector.extract_strided_slice %380 {offsets = [0, 32], sizes = [4, 32], strides = [1, 1]} : vector<4x128xf32> to vector<4x32xf32>
    %388 = arith.negf %387 : vector<4x32xf32>
    %389 = math.exp %388 : vector<4x32xf32>
    %cst_69 = arith.constant 1.000000e+00 : f32
    %390 = vector.broadcast %cst_69 : f32 to vector<4x32xf32>
    %391 = arith.addf %390, %389 : vector<4x32xf32>
    %392 = arith.divf %390, %391 : vector<4x32xf32>
    %393 = vector.extract_strided_slice %380 {offsets = [0, 64], sizes = [4, 32], strides = [1, 1]} : vector<4x128xf32> to vector<4x32xf32>
    %394 = math.tanh %393 : vector<4x32xf32>
    %395 = vector.extract_strided_slice %380 {offsets = [0, 96], sizes = [4, 32], strides = [1, 1]} : vector<4x128xf32> to vector<4x32xf32>
    %396 = arith.negf %395 : vector<4x32xf32>
    %397 = math.exp %396 : vector<4x32xf32>
    %cst_70 = arith.constant 1.000000e+00 : f32
    %398 = vector.broadcast %cst_70 : f32 to vector<4x32xf32>
    %399 = arith.addf %398, %397 : vector<4x32xf32>
    %400 = arith.divf %398, %399 : vector<4x32xf32>
    %401 = arith.mulf %392, %347 : vector<4x32xf32>
    %402 = arith.mulf %386, %394 : vector<4x32xf32>
    %403 = arith.addf %401, %402 : vector<4x32xf32>
    %404 = math.tanh %403 : vector<4x32xf32>
    %405 = arith.mulf %400, %404 : vector<4x32xf32>
    %406 = vector.extract_strided_slice %5 {offsets = [28, 0], sizes = [4, 128], strides = [1, 1]} : vector<32x128xf32> to vector<4x128xf32>
    %cst_71 = arith.constant dense<0.000000e+00> : vector<4x128xf32>
    %407 = tpu.matmul %377, %11, %cst_71 {dimension_numbers = #tpu.dot_dimension_numbers<[1], [0], [0], [1], [0, 0, 1, 1], [], []>} : vector<4x32xf32>, vector<32x128xf32>, vector<4x128xf32> -> vector<4x128xf32>
    %408 = arith.addf %406, %407 : vector<4x128xf32>
    %409 = vector.extract_strided_slice %408 {offsets = [0, 0], sizes = [4, 32], strides = [1, 1]} : vector<4x128xf32> to vector<4x32xf32>
    %410 = arith.negf %409 : vector<4x32xf32>
    %411 = math.exp %410 : vector<4x32xf32>
    %cst_72 = arith.constant 1.000000e+00 : f32
    %412 = vector.broadcast %cst_72 : f32 to vector<4x32xf32>
    %413 = arith.addf %412, %411 : vector<4x32xf32>
    %414 = arith.divf %412, %413 : vector<4x32xf32>
    %415 = vector.extract_strided_slice %408 {offsets = [0, 32], sizes = [4, 32], strides = [1, 1]} : vector<4x128xf32> to vector<4x32xf32>
    %416 = arith.negf %415 : vector<4x32xf32>
    %417 = math.exp %416 : vector<4x32xf32>
    %cst_73 = arith.constant 1.000000e+00 : f32
    %418 = vector.broadcast %cst_73 : f32 to vector<4x32xf32>
    %419 = arith.addf %418, %417 : vector<4x32xf32>
    %420 = arith.divf %418, %419 : vector<4x32xf32>
    %421 = vector.extract_strided_slice %408 {offsets = [0, 64], sizes = [4, 32], strides = [1, 1]} : vector<4x128xf32> to vector<4x32xf32>
    %422 = math.tanh %421 : vector<4x32xf32>
    %423 = vector.extract_strided_slice %408 {offsets = [0, 96], sizes = [4, 32], strides = [1, 1]} : vector<4x128xf32> to vector<4x32xf32>
    %424 = arith.negf %423 : vector<4x32xf32>
    %425 = math.exp %424 : vector<4x32xf32>
    %cst_74 = arith.constant 1.000000e+00 : f32
    %426 = vector.broadcast %cst_74 : f32 to vector<4x32xf32>
    %427 = arith.addf %426, %425 : vector<4x32xf32>
    %428 = arith.divf %426, %427 : vector<4x32xf32>
    %429 = arith.mulf %420, %375 : vector<4x32xf32>
    %430 = arith.mulf %414, %422 : vector<4x32xf32>
    %431 = arith.addf %429, %430 : vector<4x32xf32>
    %432 = math.tanh %431 : vector<4x32xf32>
    %433 = arith.mulf %428, %432 : vector<4x32xf32>
    %434 = vector.extract_strided_slice %10 {offsets = [0, 0], sizes = [4, 128], strides = [1, 1]} : vector<32x128xf32> to vector<4x128xf32>
    %cst_75 = arith.constant dense<0.000000e+00> : vector<4x128xf32>
    %435 = tpu.matmul %405, %12, %cst_75 {dimension_numbers = #tpu.dot_dimension_numbers<[1], [0], [0], [1], [0, 0, 1, 1], [], []>} : vector<4x32xf32>, vector<32x128xf32>, vector<4x128xf32> -> vector<4x128xf32>
    %436 = arith.addf %434, %435 : vector<4x128xf32>
    %437 = vector.extract_strided_slice %436 {offsets = [0, 0], sizes = [4, 32], strides = [1, 1]} : vector<4x128xf32> to vector<4x32xf32>
    %438 = arith.negf %437 : vector<4x32xf32>
    %439 = math.exp %438 : vector<4x32xf32>
    %cst_76 = arith.constant 1.000000e+00 : f32
    %440 = vector.broadcast %cst_76 : f32 to vector<4x32xf32>
    %441 = arith.addf %440, %439 : vector<4x32xf32>
    %442 = arith.divf %440, %441 : vector<4x32xf32>
    %443 = vector.extract_strided_slice %436 {offsets = [0, 32], sizes = [4, 32], strides = [1, 1]} : vector<4x128xf32> to vector<4x32xf32>
    %444 = arith.negf %443 : vector<4x32xf32>
    %445 = math.exp %444 : vector<4x32xf32>
    %cst_77 = arith.constant 1.000000e+00 : f32
    %446 = vector.broadcast %cst_77 : f32 to vector<4x32xf32>
    %447 = arith.addf %446, %445 : vector<4x32xf32>
    %448 = arith.divf %446, %447 : vector<4x32xf32>
    %449 = vector.extract_strided_slice %436 {offsets = [0, 64], sizes = [4, 32], strides = [1, 1]} : vector<4x128xf32> to vector<4x32xf32>
    %450 = math.tanh %449 : vector<4x32xf32>
    %451 = vector.extract_strided_slice %436 {offsets = [0, 96], sizes = [4, 32], strides = [1, 1]} : vector<4x128xf32> to vector<4x32xf32>
    %452 = arith.negf %451 : vector<4x32xf32>
    %453 = math.exp %452 : vector<4x32xf32>
    %cst_78 = arith.constant 1.000000e+00 : f32
    %454 = vector.broadcast %cst_78 : f32 to vector<4x32xf32>
    %455 = arith.addf %454, %453 : vector<4x32xf32>
    %456 = arith.divf %454, %455 : vector<4x32xf32>
    %457 = arith.mulf %448, %403 : vector<4x32xf32>
    %458 = arith.mulf %442, %450 : vector<4x32xf32>
    %459 = arith.addf %457, %458 : vector<4x32xf32>
    %460 = math.tanh %459 : vector<4x32xf32>
    %461 = arith.mulf %456, %460 : vector<4x32xf32>
    %c0_79 = arith.constant 0 : index
    %c0_80 = arith.constant 0 : index
    %462 = vector.load %arg1[%c0_79, %c0_80] : memref<4x16xf32, #tpu.memory_space<vmem>>, vector<4x16xf32>
    %463 = tpu.concatenate %433, %461, %462 in 1 : vector<4x32xf32>, vector<4x32xf32>, vector<4x16xf32> -> vector<4x80xf32>
    %c0_81 = arith.constant 0 : index
    %c0_82 = arith.constant 0 : index
    %464 = vector.load %arg8[%c0_81, %c0_82] : memref<80x64xf32, #tpu.memory_space<vmem>>, vector<80x64xf32>
    %cst_83 = arith.constant dense<0.000000e+00> : vector<4x64xf32>
    %465 = tpu.matmul %463, %464, %cst_83 {dimension_numbers = #tpu.dot_dimension_numbers<[1], [0], [0], [1], [0, 0, 1, 1], [], []>} : vector<4x80xf32>, vector<80x64xf32>, vector<4x64xf32> -> vector<4x64xf32>
    %c0_84 = arith.constant 0 : index
    %c0_85 = arith.constant 0 : index
    %466 = vector.load %arg9[%c0_84, %c0_85] : memref<1x64xf32, #tpu.memory_space<vmem>>, vector<1x64xf32>
    %467 = vector.broadcast %466 : vector<1x64xf32> to vector<4x64xf32>
    %468 = arith.addf %465, %467 : vector<4x64xf32>
    %469 = math.tanh %468 : vector<4x64xf32>
    %c0_86 = arith.constant 0 : index
    %c0_87 = arith.constant 0 : index
    %470 = vector.load %arg10[%c0_86, %c0_87] : memref<64x64xf32, #tpu.memory_space<vmem>>, vector<64x64xf32>
    %cst_88 = arith.constant dense<0.000000e+00> : vector<4x64xf32>
    %471 = tpu.matmul %469, %470, %cst_88 {dimension_numbers = #tpu.dot_dimension_numbers<[1], [0], [0], [1], [0, 0, 1, 1], [], []>} : vector<4x64xf32>, vector<64x64xf32>, vector<4x64xf32> -> vector<4x64xf32>
    %c0_89 = arith.constant 0 : index
    %c0_90 = arith.constant 0 : index
    %472 = vector.load %arg11[%c0_89, %c0_90] : memref<1x64xf32, #tpu.memory_space<vmem>>, vector<1x64xf32>
    %473 = vector.broadcast %472 : vector<1x64xf32> to vector<4x64xf32>
    %474 = arith.addf %471, %473 : vector<4x64xf32>
    %475 = math.tanh %474 : vector<4x64xf32>
    %c0_91 = arith.constant 0 : index
    %c0_92 = arith.constant 0 : index
    %476 = vector.load %arg12[%c0_91, %c0_92] : memref<64x64xf32, #tpu.memory_space<vmem>>, vector<64x64xf32>
    %cst_93 = arith.constant dense<0.000000e+00> : vector<4x64xf32>
    %477 = tpu.matmul %475, %476, %cst_93 {dimension_numbers = #tpu.dot_dimension_numbers<[1], [0], [0], [1], [0, 0, 1, 1], [], []>} : vector<4x64xf32>, vector<64x64xf32>, vector<4x64xf32> -> vector<4x64xf32>
    %c0_94 = arith.constant 0 : index
    %c0_95 = arith.constant 0 : index
    %478 = vector.load %arg13[%c0_94, %c0_95] : memref<1x64xf32, #tpu.memory_space<vmem>>, vector<1x64xf32>
    %479 = vector.broadcast %478 : vector<1x64xf32> to vector<4x64xf32>
    %480 = arith.addf %477, %479 : vector<4x64xf32>
    %481 = math.tanh %480 : vector<4x64xf32>
    %c0_96 = arith.constant 0 : index
    %c0_97 = arith.constant 0 : index
    %482 = vector.load %arg14[%c0_96, %c0_97] : memref<64x3xf32, #tpu.memory_space<vmem>>, vector<64x3xf32>
    %cst_98 = arith.constant dense<0.000000e+00> : vector<4x3xf32>
    %483 = tpu.matmul %481, %482, %cst_98 {dimension_numbers = #tpu.dot_dimension_numbers<[1], [0], [0], [1], [0, 0, 1, 1], [], []>} : vector<4x64xf32>, vector<64x3xf32>, vector<4x3xf32> -> vector<4x3xf32>
    %c0_99 = arith.constant 0 : index
    %c0_100 = arith.constant 0 : index
    %484 = vector.load %arg15[%c0_99, %c0_100] : memref<1x3xf32, #tpu.memory_space<vmem>>, vector<1x3xf32>
    %485 = vector.broadcast %484 : vector<1x3xf32> to vector<4x3xf32>
    %486 = arith.addf %483, %485 : vector<4x3xf32>
    %c0_101 = arith.constant 0 : index
    %c0_102 = arith.constant 0 : index
    %487 = vector.load %arg16[%c0_101, %c0_102] : memref<4x3xf32, #tpu.memory_space<vmem>>, vector<4x3xf32>
    tpu.vector_store %arg16[%c0_101, %c0_102], %486 {strides = array<i32>} : memref<4x3xf32, #tpu.memory_space<vmem>>, vector<4x3xf32>,
    return
  }
}

</mosaic_0001>

<bundles_post_ra>
// kernel: stack_lstm_forward.1
= control target key start
LH: loop header
LB: loop body
LE: loop exit
PB: predicated region body
PF: predicated region fallthrough
CT: control target
= control target key end

     0   :  { %s3625_s0 = inlined_call_operand.vmem [shape: f32[32,32], index: 0, kind: input, shape index: {}]   ;;  %s3626_s1 = inlined_call_operand.vmem [shape: f32[4,16], index: 1, kind: input, shape index: {}]   ;;  %s3627_s2 = inlined_call_operand.vmem [shape: f32[32,128], index: 2, kind: input, shape index: {}]   ;;  %s3628_s3 = inlined_call_operand.vmem [shape: f32[32,128], index: 3, kind: input, shape index: {}]   ;;  %s3629_s4 = inlined_call_operand.vmem [shape: f32[1,128], index: 4, kind: input, shape index: {}]   ;;  %s3630_s5 = inlined_call_operand.vmem [shape: f32[32,128], index: 5, kind: input, shape index: {}]   ;;  %s3631_s6 = inlined_call_operand.vmem [shape: f32[32,128], index: 6, kind: input, shape index: {}]   ;;  %s3632_s7 = inlined_call_operand.vmem [shape: f32[1,128], index: 7, kind: input, shape index: {}]   ;;  %s3633_s8 = inlined_call_operand.vmem [shape: f32[80,64], index: 8, kind: input, shape index: {}]   ;;  %s3634_s9 = inlined_call_operand.vmem [shape: f32[1,64], index: 9, kind: input, shape index: {}]   ;;  %s3635_s10 = inlined_call_operand.vmem [shape: f32[64,64], index: 10, kind: input, shape index: {}]   ;;  %s3636_s11 = inlined_call_operand.vmem [shape: f32[1,64], index: 11, kind: input, shape index: {}]   ;;  %s3637_s12 = inlined_call_operand.vmem [shape: f32[64,64], index: 12, kind: input, shape index: {}]   ;;  %s3638_s13 = inlined_call_operand.vmem [shape: f32[1,64], index: 13, kind: input, shape index: {}]   ;;  %s3639_s14 = inlined_call_operand.vmem [shape: f32[64,3], index: 14, kind: input, shape index: {}]   ;;  %s3640_s15 = inlined_call_operand.vmem [shape: f32[1,3], index: 15, kind: input, shape index: {}]   ;;  %s3641_s16 = inlined_call_operand.hbm [shape: f32[4,3], index: 16, kind: output, shape index: {}]  }
   0x1   :  { %3643 = sst [smem:[#allocation5_spill]] %s3625_s0 }
   0x2   :  { %v170_v0 = vld [vmem:[%s3630_s5 + $0x18] sm:$0xff]  ;;  %v169_v2 = vld [vmem:[%s3630_s5 + $0x10] sm:$0xff]  ;;  %v168_v4 = vld [vmem:[%s3630_s5 + $0x8] sm:$0xff]  ;;  %s3644_s24 = sld [smem:[#allocation5_spill]]  ;;  %vm69_vm0 = vcmask 261120  }
   0x3   :  { %v61_v1 = vld [vmem:[%s3627_s2 + $0x18] sm:$0xff]  ;;  %2526 = vmatprep.subr.mxu1 %v170_v0  ;;  %v60_v3 = vld [vmem:[%s3627_s2 + $0x10] sm:$0xff]  ;;  %v59_v5 = vld [vmem:[%s3627_s2 + $0x8] sm:$0xff] }
   0x4   :  { %2512 = vmatprep.subr.mxu0 %v61_v1  ;;  %2527 = vmatpush3.msra.mxu1 %v170_v0  ;;  %v167_v6 = vld [vmem:[%s3630_s5] sm:$0xff] }
   0x5   :  { %2513 = vmatpush3.msra.mxu0 %v61_v1  ;;  %2528 = vmatprep.subr.mxu1 %v169_v2  ;;  %v58_v7 = vld [vmem:[%s3627_s2] sm:$0xff] }
   0x6   :  { %2514 = vmatprep.subr.mxu0 %v60_v3  ;;  %2529 = vmatpush3.msra.mxu1 %v169_v2 }
   0x7   :  { %2515 = vmatpush3.msra.mxu0 %v60_v3  ;;  %2530 = vmatprep.subr.mxu1 %v168_v4 }
   0x8   :  { %2516 = vmatprep.subr.mxu0 %v59_v5  ;;  %v54_v8 = vld [vmem:[%s3644_s24] sm:$0xff]  ;;  %2531 = vmatpush3.msra.mxu1 %v168_v4 }
   0x9   :  { %2517 = vmatpush3.msra.mxu0 %v59_v5 }
   0xa   :  { %21 = vsyncpa [#allocation3], 0  ;;  %2532 = vmatprep.subr.mxu1 %v167_v6  ;;  %2518 = vmatprep.subr.mxu0 %v58_v7  ;;  %v55_v9 = vld [vmem:[%s3644_s24 + $0x8] sm:$0xff]  ;;  %v3082_v10 = vld [vmem:[%s3631_s6 + $0x18] sm:$0xff]  ;;  %v2957_v12 = vmov 0.0   ;;  %vm2958_vm1 = vmmov 0  }
   0xb   :  { %2533 = vmatpush3.msra.mxu1 %v167_v6  ;;  %2534 = vmatprep.mubr.msk.f32.mxu1 %vm69_vm0, %v54_v8  ;;  %v3087_v11 = vld [vmem:[%s3628_s3 + $0x18] sm:$0xff]  ;;  %v56_v13 = vld [vmem:[%s3644_s24 + $0x10] sm:$0xff]  ;;  %v3120_v17 = vld [vmem:[%s3631_s6 + $0x8] sm:$0xff]  ;;  %vm1953_vm2 = vcmask 523264   ;;  %vm1974_vm3 = vcmask 654336   ;;  %vm2314_vm4 = vcmask 19456  }
   0xc   :  { %2519 = vmatpush3.msra.mxu0 %v58_v7  ;;  %2520 = vmatprep.mubr.msk.f32.mxu0 %vm69_vm0, %v54_v8  ;;  %v3099_v14 = vld [vmem:[%s3631_s6 + $0x10] sm:$0xff]  ;;  %v57_v15 = vld [vmem:[%s3644_s24 + $0x18] sm:$0xff]  ;;  %v3125_v18 = vld [vmem:[%s3628_s3 + $0x8] sm:$0xff] }
   0xd   :  { %2535 = vmatmul.mubr.msk.f32.vlgmr.msra.gmra.mxu1 %vm69_vm0, %v55_v9  ;;  %2551 = vmatprep.subr.mxu1 %v2957_v12  ;;  %v3111_v16 = vld [vmem:[%s3628_s3 + $0x10] sm:$0xff]  ;;  %v3134_v19 = vld [vmem:[%s3631_s6] sm:$0xff] }
   0xe   :  { %2521 = vmatmul.mubr.msk.f32.vlgmr.msra.gmra.mxu0 %vm69_vm0, %v55_v9  ;;  %2540 = vmatprep.subr.mxu0 %v2957_v12  ;;  %v3141_v20 = vld [vmem:[%s3628_s3] sm:$0xff] }
   0xf   :  { %2552 = vmatpush3.msra.mxu1 %v3082_v10  ;;  %2541 = vmatpush3.msra.mxu0 %v3087_v11  ;;  %v2335_v21 = vld [vmem:[%s3632_s7] ss:$0 sm:$0xff]  ;;  %s2960_s7 = smov 32  }
  0x10   :  { %2553 = vmatprep.subr.mxu1 %v2957_v12  ;;  %2537 = vmatprep.mubr.msk.f32.mxu1 %vm69_vm0, %v56_v13  ;;  %v2330_v22 = vld [vmem:[%s3629_s4] ss:$0 sm:$0xff]  ;;  %s2959_s4 = smov 64  }
  0x11   :  { %2542 = vmatprep.subr.mxu0 %v2957_v12  ;;  %2554 = vmatpush3.msra.mxu1 %v3099_v14 }
  0x12   :  { %2523 = vmatprep.mubr.msk.f32.mxu0 %vm69_vm0, %v56_v13  ;;  %2538 = vmatmul.mubr.msk.f32.gmra.mxu1 %vm69_vm0, %v57_v15 }
  0x13   :  { %2543 = vmatpush3.msra.mxu0 %v3111_v16  ;;  %2555 = vmatprep.subr.mxu1 %v2957_v12 }
  0x14   :  { %2524 = vmatmul.mubr.msk.f32.gmra.mxu0 %vm69_vm0, %v57_v15  ;;  %2544 = vmatprep.subr.mxu0 %v2957_v12 }
  0x15   :  { %2556 = vmatpush3.msra.mxu1 %v3120_v17  ;;  %2545 = vmatpush3.msra.mxu0 %v3125_v18 }
  0x16   :  { %2557 = vmatprep.subr.mxu1 %v2957_v12  ;;  %2546 = vmatprep.subr.mxu0 %v2957_v12 }
  0x17   :  { %2558 = vmatpush3.msra.mxu1 %v3134_v19  ;;  %2559 = vmatprep.mubr.msk.f32.mxu1 %vm2958_vm1, %v2957_v12 }
  0x18   :  { %2547 = vmatpush3.msra.mxu0 %v3141_v20  ;;  %2548 = vmatprep.mubr.msk.f32.mxu0 %vm2958_vm1, %v2957_v12 }
  0x19   :  { %2560 = vmatmul.mubr.f32.vlgmr.msra.gmra.mxu1 %v2957_v12  ;;  %2549 = vmatmul.mubr.f32.vlgmr.msra.gmra.mxu0 %v2957_v12 }
  0x1a   :  { %2573 = vmatprep.subr.mxu1 %v2957_v12  ;;  %2562 = vmatprep.subr.mxu0 %v2957_v12 }
  0x1b   :  { %2574 = vmatpush3.msra.mxu1 %v3082_v10  ;;  %2563 = vmatpush3.msra.mxu0 %v3087_v11 }
  0x1c   :  { %2575 = vmatprep.subr.mxu1 %v2957_v12  ;;  %2564 = vmatprep.subr.mxu0 %v2957_v12 }
  0x1d   :  { %2576 = vmatpush3.msra.mxu1 %v3099_v14  ;;  %2565 = vmatpush3.msra.mxu0 %v3111_v16 }
  0x1e   :  { %2577 = vmatprep.subr.mxu1 %v2957_v12  ;;  %2566 = vmatprep.subr.mxu0 %v2957_v12 }
  0x1f   :  { %2578 = vmatpush3.msra.mxu1 %v3120_v17  ;;  %2567 = vmatpush3.msra.mxu0 %v3125_v18 }
  0x20   :  { %2579 = vmatprep.subr.mxu1 %v2957_v12  ;;  %2581 = vmatprep.mubr.msk.f32.mxu1 %vm2958_vm1, %v2957_v12 }
  0x21   :  { %2580 = vmatpush3.msra.mxu1 %v3134_v19  ;;  %2568 = vmatprep.subr.mxu0 %v2957_v12 }
  0x22   :  { %2569 = vmatpush3.msra.mxu0 %v3141_v20  ;;  %2570 = vmatprep.mubr.msk.f32.mxu0 %vm2958_vm1, %v2957_v12 }
  0x23   :  { %2595 = vmatprep.subr.mxu1 %v2957_v12  ;;  %2584 = vmatprep.subr.mxu0 %v2957_v12 }
  0xcd   :  { %v2536_v23 = vpop.f32.mrf.mxu1 }
  0xce   :  { %v3181_v24 = vadd.f32 %v2536_v23, %v2335_v21  ;;  %v2522_v25 = vpop.f32.mrf.mxu0 }
  0xcf   :  { %v3183_v26 = vadd.f32 %v2522_v25, %v2330_v22  ;;  %v244_v27 = vpop.f32.mrf.mxu1 }
  0xd0   :  { %v3185_v28 = vadd.f32 %v2335_v21, %v244_v27  ;;  %v148_v29 = vpop.f32.mrf.mxu0 }
  0xd1   :  { %v3193_v39 = vadd.f32 %v2330_v22, %v148_v29 }
  0xd2   :  { %v2539_v30 = vpop.f32.mrf.mxu1 }
  0xd3   :  { %v3195_v40 = vadd.f32 %v2539_v30, %v2335_v21 }
  0xd4   :  { %v2525_v31 = vpop.f32.mrf.mxu0  ;;  %v254_v32 = vpop.f32.mrf.mxu1 }
  0xd5   :  { %v3187_v33 = vadd.f32 %v2525_v31, %v2330_v22  ;;  %v3189_v34 = vadd.f32 %v2335_v21, %v254_v32 }
  0xd6   :  { %v158_v35 = vpop.f32.mrf.mxu0 }
  0xd7   :  { %v3191_v36 = vadd.f32 %v2330_v22, %v158_v35 }
  0xd9   :  { %v435_v37 = vpop.f32.mrf.mxu1  ;;  %v340_v38 = vpop.f32.mrf.mxu0 }
  0xda   :  { %v440_v41 = vrot.slane %v435_v37, 4  ;;  %v344_v45 = vadd.f32 %v340_v38, %v3193_v39 }
  0xdb   :  { %v2561_v42 = vpop.f32.mrf.mxu1  ;;  %v2550_v43 = vpop.f32.mrf.mxu0 }
  0xdc   :  { %v442_v44 = vadd.f32 %v440_v41, %v3195_v40  ;;  %v2340_v49 = vmul.f32 -1.442695, %v344_v45 }
  0xde   :  { %2801 = vtanh.f32 %v442_v44  ;;  %v2341_v48 = vmul.f32 -1.442695, %v442_v44 }
  0xdf   :  { %2803 = vtanh.f32 %v344_v45 }
  0xe0   :  { %2805 = vpow2.f32 %v2341_v48 }
  0xe1   :  { %2807 = vpow2.f32 %v2340_v49 }
  0xeb   :  { %v2802_v46 = vpop.eup %2801 }
  0xec   :  { %452 = vrot.lane.b32.xlu0 %v2802_v46, %s2959_s4  ;;  %v2804_v47 = vpop.eup %2803 }
  0xed   :  { %v2806_v50 = vpop.eup %2805 }
  0xee   :  { %v446_v51 = vadd.f32 1.0, %v2806_v50  ;;  %v2808_v52 = vpop.eup %2807 }
  0xef   :  { %v348_v53 = vadd.f32 1.0, %v2808_v52 }
  0xf0   :  { %354 = vrot.lane.b32.xlu0 %v2804_v47, %s2959_s4  ;;  %2809 = vrcp.f32 %v446_v51 }
  0xf1   :  { %2811 = vrcp.f32 %v348_v53 }
  0xfd   :  { %v2810_v54 = vpop.eup %2809 }
  0xfe   :  { %v2812_v57 = vpop.eup %2811  ;;  %v450_v60 = vmul.f32 0.0, %v2810_v54 }
  0xff   :  { %v352_v63 = vmul.f32 0.0, %v2812_v57 }
 0x15e   :  { %v453_v55 = vpop.permute.xlu0 %452 }
 0x15f   :  { %v455_v56 = vmul.f32 %v2810_v54, %v453_v55 }
 0x161   :  { %457 = vrot.lane.b32.xlu1 %v455_v56, %s2960_s7 }
 0x162   :  { %v355_v58 = vpop.permute.xlu0 %354 }
 0x163   :  { %v357_v59 = vmul.f32 %v2812_v57, %v355_v58 }
 0x165   :  { %359 = vrot.lane.b32.xlu1 %v357_v59, %s2960_s7 }
 0x1d3   :  { %v458_v61 = vpop.permute.xlu1 %457 }
 0x1d4   :  { %v3203_v62 = vadd.f32 %v458_v61, %v450_v60 }
 0x1d6   :  { %2813 = vtanh.f32 %v3203_v62  ;;  %v658_v47 = vrot.slane %v3203_v62, 4 }
 0x1d7   :  { %v360_v0 = vpop.permute.xlu1 %359 }
 0x1d8   :  { %v3206_v1 = vadd.f32 %v360_v0, %v352_v63 }
 0x1da   :  { %2815 = vtanh.f32 %v3206_v1  ;;  %v554_v50 = vrot.slane %v3206_v1, 4 }
 0x1e3   :  { %v2814_v2 = vpop.eup %2813 }
 0x1e4   :  { %463 = vrot.lane.b32.xlu0 %v2814_v2, %s2959_s4 }
 0x1e7   :  { %v2816_v3 = vpop.eup %2815 }
 0x1e8   :  { %365 = vrot.lane.b32.xlu1 %v2816_v3, %s2959_s4 }
 0x256   :  { %v464_v4 = vpop.permute.xlu0 %463 }
 0x257   :  { %v466_v5 = vmul.f32 %v2810_v54, %v464_v4 }
 0x259   :  { %v574_v6 = vrot.slane %v466_v5, 4 }
 0x25a   :  { %v366_v7 = vpop.permute.xlu1 %365 }
 0x25b   :  { %v368_v8 = vmul.f32 %v2812_v57, %v366_v7  ;;  %575 = vrot.lane.b32.xlu1 %v574_v6, %s2960_s7 }
 0x25d   :  { %468 = vrot.lane.b32.xlu0 %v368_v8, %s2960_s7 }
 0x2cd   :  { %v576_v9 = vpop.permute.xlu1 %575 }
 0x2ce   :  { %2582 = vmatmul.mubr.msk.f32.vlgmr.msra.gmra.mxu1 %vm69_vm0, %v576_v9 }
 0x2cf   :  { %v469_v13 = vpop.permute.xlu0 %468  ;;  %2596 = vmatpush3.msra.mxu1 %v3082_v10  ;;  %2603 = vmatprep.mubr.msk.f32.mxu1 %vm2958_vm1, %v2957_v12 }
 0x2d0   :  { %2571 = vmatmul.mubr.msk.f32.vlgmr.msra.gmra.mxu0 %vm69_vm0, %v469_v13  ;;  %2597 = vmatprep.subr.mxu1 %v2957_v12 }
 0x2d1   :  { %2598 = vmatpush3.msra.mxu1 %v3099_v14  ;;  %2585 = vmatpush3.msra.mxu0 %v3087_v11 }
 0x2d2   :  { %2599 = vmatprep.subr.mxu1 %v2957_v12  ;;  %2586 = vmatprep.subr.mxu0 %v2957_v12 }
 0x2d3   :  { %2600 = vmatpush3.msra.mxu1 %v3120_v17  ;;  %2587 = vmatpush3.msra.mxu0 %v3111_v16 }
 0x2d4   :  { %2601 = vmatprep.subr.mxu1 %v2957_v12  ;;  %2588 = vmatprep.subr.mxu0 %v2957_v12 }
 0x2d5   :  { %2602 = vmatpush3.msra.mxu1 %v3134_v19  ;;  %2589 = vmatpush3.msra.mxu0 %v3125_v18 }
 0x2d6   :  { %2590 = vmatprep.subr.mxu0 %v2957_v12  ;;  %2592 = vmatprep.mubr.msk.f32.mxu0 %vm2958_vm1, %v2957_v12 }
 0x2d7   :  { %2591 = vmatpush3.msra.mxu0 %v3141_v20  ;;  %2617 = vmatprep.subr.mxu1 %v2957_v12 }
 0x2d8   :  { %2606 = vmatprep.subr.mxu0 %v2957_v12 }
 0x38e   :  { %v645_v15 = vpop.f32.mrf.mxu1 }
 0x38f   :  { %v649_v21 = vadd.f32 %v645_v15, %v3195_v40 }
 0x390   :  { %v538_v22 = vpop.f32.mrf.mxu0  ;;  %v2583_v23 = vpop.f32.mrf.mxu1 }
 0x391   :  { %2817 = vtanh.f32 %v649_v21  ;;  %v543_v25 = vrot.slane %v538_v22, 4  ;;  %v2345_v32 = vmul.f32 -1.442695, %v649_v21 }
 0x392   :  { %v2572_v27 = vpop.f32.mrf.mxu0 }
 0x393   :  { %v545_v29 = vadd.f32 %v543_v25, %v3193_v39 }
 0x395   :  { %2819 = vtanh.f32 %v545_v29  ;;  %v2343_v35 = vmul.f32 -1.442695, %v545_v29 }
 0x396   :  { %2821 = vpow2.f32 %v2345_v32 }
 0x397   :  { %2823 = vpow2.f32 %v2343_v35 }
 0x39e   :  { %v2818_v30 = vpop.eup %2817 }
 0x39f   :  { %662 = vrot.lane.b32.xlu0 %v2818_v30, %s2959_s4 }
 0x3a2   :  { %v2820_v31 = vpop.eup %2819 }
 0x3a3   :  { %558 = vrot.lane.b32.xlu1 %v2820_v31, %s2959_s4  ;;  %v2822_v37 = vpop.eup %2821 }
 0x3a4   :  { %v653_v38 = vadd.f32 1.0, %v2822_v37  ;;  %v2824_v40 = vpop.eup %2823 }
 0x3a5   :  { %v549_v41 = vadd.f32 1.0, %v2824_v40 }
 0x3a6   :  { %2825 = vrcp.f32 %v653_v38 }
 0x3a7   :  { %2827 = vrcp.f32 %v549_v41 }
 0x3b3   :  { %v2826_v42 = vpop.eup %2825 }
 0x3b4   :  { %v2828_v44 = vpop.eup %2827  ;;  %v660_v48 = vmul.f32 %v2826_v42, %v658_v47 }
 0x3b5   :  { %v556_v52 = vmul.f32 %v2828_v44, %v554_v50 }
 0x411   :  { %v663_v43 = vpop.permute.xlu0 %662 }
 0x412   :  { %v665_v39 = vmul.f32 %v2826_v42, %v663_v43 }
 0x414   :  { %667 = vrot.lane.b32.xlu0 %v665_v39, %s2960_s7 }
 0x415   :  { %v559_v45 = vpop.permute.xlu1 %558 }
 0x416   :  { %v561_v46 = vmul.f32 %v2828_v44, %v559_v45 }
 0x418   :  { %563 = vrot.lane.b32.xlu1 %v561_v46, %s2960_s7 }
 0x486   :  { %v668_v49 = vpop.permute.xlu0 %667 }
 0x487   :  { %v3243_v51 = vadd.f32 %v668_v49, %v660_v48 }
 0x489   :  { %2829 = vtanh.f32 %v3243_v51  ;;  %v868_v35 = vrot.slane %v3243_v51, 4 }
 0x48a   :  { %v564_v53 = vpop.permute.xlu1 %563 }
 0x48b   :  { %v3246_v54 = vadd.f32 %v564_v53, %v556_v52 }
 0x48d   :  { %2831 = vtanh.f32 %v3246_v54  ;;  %v762_v40 = vrot.slane %v3246_v54, 4 }
 0x496   :  { %v2830_v55 = vpop.eup %2829 }
 0x497   :  { %673 = vrot.lane.b32.xlu0 %v2830_v55, %s2959_s4 }
 0x49a   :  { %v2832_v56 = vpop.eup %2831 }
 0x49b   :  { %569 = vrot.lane.b32.xlu1 %v2832_v56, %s2959_s4 }
 0x509   :  { %v674_v57 = vpop.permute.xlu0 %673 }
 0x50a   :  { %v676_v58 = vmul.f32 %v2826_v42, %v674_v57 }
 0x50c   :  { %782 = vrot.lane.b32.xlu0 %v676_v58, %s2960_s7 }
 0x50d   :  { %v570_v59 = vpop.permute.xlu1 %569 }
 0x50e   :  { %v572_v60 = vmul.f32 %v2828_v44, %v570_v59 }
 0x510   :  { %v678_v61 = vrot.slane %v572_v60, 4 }
 0x512   :  { %679 = vrot.lane.b32.xlu1 %v678_v61, %s2960_s7 }
 0x57e   :  { %v783_v62 = vpop.permute.xlu0 %782 }
 0x57f   :  { %2604 = vmatmul.mubr.msk.f32.vlgmr.msra.gmra.mxu1 %vm69_vm0, %v783_v62 }
 0x580   :  { %2618 = vmatpush3.msra.mxu1 %v3082_v10  ;;  %2625 = vmatprep.mubr.msk.f32.mxu1 %vm2958_vm1, %v2957_v12 }
 0x581   :  { %2619 = vmatprep.subr.mxu1 %v2957_v12 }
 0x582   :  { %2620 = vmatpush3.msra.mxu1 %v3099_v14 }
 0x583   :  { %2621 = vmatprep.subr.mxu1 %v2957_v12 }
 0x584   :  { %v680_v63 = vpop.permute.xlu1 %679  ;;  %2622 = vmatpush3.msra.mxu1 %v3120_v17 }
 0x585   :  { %2593 = vmatmul.mubr.msk.f32.vlgmr.msra.gmra.mxu0 %vm69_vm0, %v680_v63  ;;  %2623 = vmatprep.subr.mxu1 %v2957_v12 }
 0x586   :  { %2607 = vmatpush3.msra.mxu0 %v3087_v11  ;;  %2624 = vmatpush3.msra.mxu1 %v3134_v19 }
 0x587   :  { %2608 = vmatprep.subr.mxu0 %v2957_v12  ;;  %2614 = vmatprep.mubr.msk.f32.mxu0 %vm2958_vm1, %v2957_v12 }
 0x588   :  { %2609 = vmatpush3.msra.mxu0 %v3111_v16  ;;  %2639 = vmatprep.subr.mxu1 %v2957_v12 }
 0x589   :  { %2610 = vmatprep.subr.mxu0 %v2957_v12 }
 0x58a   :  { %2611 = vmatpush3.msra.mxu0 %v3125_v18 }
 0x58b   :  { %2612 = vmatprep.subr.mxu0 %v2957_v12 }
 0x58c   :  { %2613 = vmatpush3.msra.mxu0 %v3141_v20 }
 0x58d   :  { %2628 = vmatprep.subr.mxu0 %v2957_v12 }
 0x63f   :  { %v852_v0 = vpop.f32.mrf.mxu1 }
 0x640   :  { %v857_v1 = vrot.slane %v852_v0, 4 }
 0x641   :  { %v2605_v2 = vpop.f32.mrf.mxu1 }
 0x642   :  { %v859_v3 = vadd.f32 %v857_v1, %v3189_v34 }
 0x644   :  { %2833 = vtanh.f32 %v859_v3  ;;  %v2349_v9 = vmul.f32 -1.442695, %v859_v3 }
 0x645   :  { %v749_v4 = vpop.f32.mrf.mxu0 }
 0x646   :  { %v753_v5 = vadd.f32 %v749_v4, %v3183_v26 }
 0x647   :  { %v2594_v6 = vpop.f32.mrf.mxu0 }
 0x648   :  { %2835 = vtanh.f32 %v753_v5  ;;  %v2347_v13 = vmul.f32 -1.442695, %v753_v5 }
 0x649   :  { %2837 = vpow2.f32 %v2349_v9 }
 0x64a   :  { %2839 = vpow2.f32 %v2347_v13 }
 0x651   :  { %v2834_v7 = vpop.eup %2833 }
 0x652   :  { %872 = vrot.lane.b32.xlu0 %v2834_v7, %s2959_s4 }
 0x655   :  { %v2836_v8 = vpop.eup %2835 }
 0x656   :  { %766 = vrot.lane.b32.xlu1 %v2836_v8, %s2959_s4  ;;  %v2838_v15 = vpop.eup %2837 }
 0x657   :  { %v863_v21 = vadd.f32 1.0, %v2838_v15  ;;  %v2840_v22 = vpop.eup %2839 }
 0x658   :  { %v757_v23 = vadd.f32 1.0, %v2840_v22 }
 0x659   :  { %2841 = vrcp.f32 %v863_v21 }
 0x65a   :  { %2843 = vrcp.f32 %v757_v23 }
 0x666   :  { %v2842_v25 = vpop.eup %2841 }
 0x667   :  { %v2844_v30 = vpop.eup %2843  ;;  %v870_v37 = vmul.f32 %v2842_v25, %v868_v35 }
 0x668   :  { %v764_v42 = vmul.f32 %v2844_v30, %v762_v40 }
 0x6c4   :  { %v873_v27 = vpop.permute.xlu0 %872 }
 0x6c5   :  { %v875_v29 = vmul.f32 %v2842_v25, %v873_v27 }
 0x6c7   :  { %877 = vrot.lane.b32.xlu0 %v875_v29, %s2960_s7 }
 0x6c8   :  { %v767_v31 = vpop.permute.xlu1 %766 }
 0x6c9   :  { %v769_v32 = vmul.f32 %v2844_v30, %v767_v31 }
 0x6cb   :  { %771 = vrot.lane.b32.xlu1 %v769_v32, %s2960_s7 }
 0x739   :  { %v878_v38 = vpop.permute.xlu0 %877 }
 0x73a   :  { %v3283_v41 = vadd.f32 %v878_v38, %v870_v37 }
 0x73c   :  { %2845 = vtanh.f32 %v3283_v41  ;;  %v1078_v8 = vrot.slane %v3283_v41, 4 }
 0x73d   :  { %v772_v43 = vpop.permute.xlu1 %771 }
 0x73e   :  { %v3286_v39 = vadd.f32 %v772_v43, %v764_v42 }
 0x740   :  { %2847 = vtanh.f32 %v3286_v39  ;;  %v974_v15 = vrot.slane %v3286_v39, 4 }
 0x749   :  { %v2846_v44 = vpop.eup %2845 }
 0x74a   :  { %883 = vrot.lane.b32.xlu0 %v2846_v44, %s2959_s4 }
 0x74d   :  { %v2848_v45 = vpop.eup %2847 }
 0x74e   :  { %777 = vrot.lane.b32.xlu1 %v2848_v45, %s2959_s4 }
 0x7bc   :  { %v884_v46 = vpop.permute.xlu0 %883 }
 0x7bd   :  { %v886_v47 = vmul.f32 %v2842_v25, %v884_v46 }
 0x7bf   :  { %v994_v48 = vrot.slane %v886_v47, 4 }
 0x7c0   :  { %v778_v49 = vpop.permute.xlu1 %777 }
 0x7c1   :  { %v780_v50 = vmul.f32 %v2844_v30, %v778_v49  ;;  %995 = vrot.lane.b32.xlu1 %v994_v48, %s2960_s7 }
 0x7c3   :  { %888 = vrot.lane.b32.xlu0 %v780_v50, %s2960_s7 }
 0x833   :  { %v996_v51 = vpop.permute.xlu1 %995 }
 0x834   :  { %2626 = vmatmul.mubr.msk.f32.vlgmr.msra.gmra.mxu1 %vm69_vm0, %v996_v51 }
 0x835   :  { %v889_v52 = vpop.permute.xlu0 %888  ;;  %2640 = vmatpush3.msra.mxu1 %v3082_v10  ;;  %2647 = vmatprep.mubr.msk.f32.mxu1 %vm2958_vm1, %v2957_v12 }
 0x836   :  { %2615 = vmatmul.mubr.msk.f32.vlgmr.msra.gmra.mxu0 %vm69_vm0, %v889_v52  ;;  %2641 = vmatprep.subr.mxu1 %v2957_v12 }
 0x837   :  { %2642 = vmatpush3.msra.mxu1 %v3099_v14  ;;  %2629 = vmatpush3.msra.mxu0 %v3087_v11 }
 0x838   :  { %2643 = vmatprep.subr.mxu1 %v2957_v12  ;;  %2630 = vmatprep.subr.mxu0 %v2957_v12 }
 0x839   :  { %2644 = vmatpush3.msra.mxu1 %v3120_v17  ;;  %2631 = vmatpush3.msra.mxu0 %v3111_v16 }
 0x83a   :  { %2645 = vmatprep.subr.mxu1 %v2957_v12  ;;  %2632 = vmatprep.subr.mxu0 %v2957_v12 }
 0x83b   :  { %2646 = vmatpush3.msra.mxu1 %v3134_v19  ;;  %2633 = vmatpush3.msra.mxu0 %v3125_v18 }
 0x83c   :  { %2634 = vmatprep.subr.mxu0 %v2957_v12  ;;  %2636 = vmatprep.mubr.msk.f32.mxu0 %vm2958_vm1, %v2957_v12 }
 0x83d   :  { %2635 = vmatpush3.msra.mxu0 %v3141_v20  ;;  %2661 = vmatprep.subr.mxu1 %v2957_v12 }
 0x83e   :  { %2650 = vmatprep.subr.mxu0 %v2957_v12 }
 0x8f4   :  { %v1065_v53 = vpop.f32.mrf.mxu1 }
 0x8f5   :  { %v1069_v54 = vadd.f32 %v1065_v53, %v3189_v34 }
 0x8f6   :  { %v958_v55 = vpop.f32.mrf.mxu0  ;;  %v2627_v56 = vpop.f32.mrf.mxu1 }
 0x8f7   :  { %2849 = vtanh.f32 %v1069_v54  ;;  %v963_v57 = vrot.slane %v958_v55, 4  ;;  %v2353_v62 = vmul.f32 -1.442695, %v1069_v54 }
 0x8f8   :  { %v2616_v58 = vpop.f32.mrf.mxu0 }
 0x8f9   :  { %v965_v59 = vadd.f32 %v963_v57, %v3183_v26 }
 0x8fb   :  { %2851 = vtanh.f32 %v965_v59  ;;  %v2351_v63 = vmul.f32 -1.442695, %v965_v59 }
 0x8fc   :  { %2853 = vpow2.f32 %v2353_v62 }
 0x8fd   :  { %2855 = vpow2.f32 %v2351_v63 }
 0x904   :  { %v2850_v60 = vpop.eup %2849 }
 0x905   :  { %1082 = vrot.lane.b32.xlu0 %v2850_v60, %s2959_s4 }
 0x908   :  { %v2852_v61 = vpop.eup %2851 }
 0x909   :  { %978 = vrot.lane.b32.xlu1 %v2852_v61, %s2959_s4  ;;  %v2854_v0 = vpop.eup %2853 }
 0x90a   :  { %v1073_v34 = vadd.f32 1.0, %v2854_v0  ;;  %v2856_v1 = vpop.eup %2855 }
 0x90b   :  { %v969_v2 = vadd.f32 1.0, %v2856_v1 }
 0x90c   :  { %2857 = vrcp.f32 %v1073_v34 }
 0x90d   :  { %2859 = vrcp.f32 %v969_v2 }
 0x919   :  { %v2858_v3 = vpop.eup %2857 }
 0x91a   :  { %v2860_v5 = vpop.eup %2859  ;;  %v1080_v9 = vmul.f32 %v2858_v3, %v1078_v8 }
 0x91b   :  { %v976_v22 = vmul.f32 %v2860_v5, %v974_v15 }
 0x977   :  { %v1083_v4 = vpop.permute.xlu0 %1082 }
 0x978   :  { %v1085_v26 = vmul.f32 %v2858_v3, %v1083_v4 }
 0x97a   :  { %1087 = vrot.lane.b32.xlu0 %v1085_v26, %s2960_s7 }
 0x97b   :  { %v979_v6 = vpop.permute.xlu1 %978 }
 0x97c   :  { %v981_v7 = vmul.f32 %v2860_v5, %v979_v6 }
 0x97e   :  { %983 = vrot.lane.b32.xlu1 %v981_v7, %s2960_s7 }
 0x9ec   :  { %v1088_v13 = vpop.permute.xlu0 %1087 }
 0x9ed   :  { %v3323_v21 = vadd.f32 %v1088_v13, %v1080_v9 }
 0x9ef   :  { %2861 = vtanh.f32 %v3323_v21  ;;  %v1288_v61 = vrot.slane %v3323_v21, 4 }
 0x9f0   :  { %v984_v23 = vpop.permute.xlu1 %983 }
 0x9f1   :  { %v3326_v25 = vadd.f32 %v984_v23, %v976_v22 }
 0x9f3   :  { %2863 = vtanh.f32 %v3326_v25  ;;  %v1182_v0 = vrot.slane %v3326_v25, 4 }
 0x9fc   :  { %v2862_v27 = vpop.eup %2861 }
 0x9fd   :  { %1093 = vrot.lane.b32.xlu0 %v2862_v27, %s2959_s4 }
 0xa00   :  { %v2864_v29 = vpop.eup %2863 }
 0xa01   :  { %989 = vrot.lane.b32.xlu1 %v2864_v29, %s2959_s4 }
 0xa6f   :  { %v1094_v30 = vpop.permute.xlu0 %1093 }
 0xa70   :  { %v1096_v31 = vmul.f32 %v2858_v3, %v1094_v30 }
 0xa72   :  { %1202 = vrot.lane.b32.xlu0 %v1096_v31, %s2960_s7 }
 0xa73   :  { %v990_v32 = vpop.permute.xlu1 %989 }
 0xa74   :  { %v992_v35 = vmul.f32 %v2860_v5, %v990_v32 }
 0xa76   :  { %v1098_v37 = vrot.slane %v992_v35, 4 }
 0xa78   :  { %1099 = vrot.lane.b32.xlu1 %v1098_v37, %s2960_s7 }
 0xae4   :  { %v1203_v38 = vpop.permute.xlu0 %1202 }
 0xae5   :  { %2648 = vmatmul.mubr.msk.f32.vlgmr.msra.gmra.mxu1 %vm69_vm0, %v1203_v38 }
 0xae6   :  { %2662 = vmatpush3.msra.mxu1 %v3082_v10  ;;  %2669 = vmatprep.mubr.msk.f32.mxu1 %vm2958_vm1, %v2957_v12 }
 0xae7   :  { %2663 = vmatprep.subr.mxu1 %v2957_v12 }
 0xae8   :  { %2664 = vmatpush3.msra.mxu1 %v3099_v14 }
 0xae9   :  { %2665 = vmatprep.subr.mxu1 %v2957_v12 }
 0xaea   :  { %v1100_v40 = vpop.permute.xlu1 %1099  ;;  %2666 = vmatpush3.msra.mxu1 %v3120_v17 }
 0xaeb   :  { %2637 = vmatmul.mubr.msk.f32.vlgmr.msra.gmra.mxu0 %vm69_vm0, %v1100_v40  ;;  %2667 = vmatprep.subr.mxu1 %v2957_v12 }
 0xaec   :  { %2651 = vmatpush3.msra.mxu0 %v3087_v11  ;;  %2668 = vmatpush3.msra.mxu1 %v3134_v19 }
 0xaed   :  { %2652 = vmatprep.subr.mxu0 %v2957_v12  ;;  %2658 = vmatprep.mubr.msk.f32.mxu0 %vm2958_vm1, %v2957_v12 }
 0xaee   :  { %2653 = vmatpush3.msra.mxu0 %v3111_v16  ;;  %2683 = vmatprep.subr.mxu1 %v2957_v12 }
 0xaef   :  { %2654 = vmatprep.subr.mxu0 %v2957_v12 }
 0xaf0   :  { %2655 = vmatpush3.msra.mxu0 %v3125_v18 }
 0xaf1   :  { %2656 = vmatprep.subr.mxu0 %v2957_v12 }
 0xaf2   :  { %2657 = vmatpush3.msra.mxu0 %v3141_v20 }
 0xaf3   :  { %2672 = vmatprep.subr.mxu0 %v2957_v12 }
 0xba5   :  { %v1272_v41 = vpop.f32.mrf.mxu1 }
 0xba6   :  { %v1277_v42 = vrot.slane %v1272_v41, 4 }
 0xba7   :  { %v2649_v43 = vpop.f32.mrf.mxu1 }
 0xba8   :  { %v1279_v39 = vadd.f32 %v1277_v42, %v3181_v24 }
 0xbaa   :  { %2865 = vtanh.f32 %v1279_v39  ;;  %v2357_v49 = vmul.f32 -1.442695, %v1279_v39 }
 0xbab   :  { %v1169_v44 = vpop.f32.mrf.mxu0 }
 0xbac   :  { %v1173_v45 = vadd.f32 %v1169_v44, %v3191_v36 }
 0xbad   :  { %v2638_v46 = vpop.f32.mrf.mxu0 }
 0xbae   :  { %2867 = vtanh.f32 %v1173_v45  ;;  %v2355_v50 = vmul.f32 -1.442695, %v1173_v45 }
 0xbaf   :  { %2869 = vpow2.f32 %v2357_v49 }
 0xbb0   :  { %2871 = vpow2.f32 %v2355_v50 }
 0xbb7   :  { %v2866_v47 = vpop.eup %2865 }
 0xbb8   :  { %1292 = vrot.lane.b32.xlu0 %v2866_v47, %s2959_s4 }
 0xbbb   :  { %v2868_v48 = vpop.eup %2867 }
 0xbbc   :  { %1186 = vrot.lane.b32.xlu1 %v2868_v48, %s2959_s4  ;;  %v2870_v51 = vpop.eup %2869 }
 0xbbd   :  { %v1283_v52 = vadd.f32 1.0, %v2870_v51  ;;  %v2872_v53 = vpop.eup %2871 }
 0xbbe   :  { %v1177_v54 = vadd.f32 1.0, %v2872_v53 }
 0xbbf   :  { %2873 = vrcp.f32 %v1283_v52 }
 0xbc0   :  { %2875 = vrcp.f32 %v1177_v54 }
 0xbcc   :  { %v2874_v55 = vpop.eup %2873 }
 0xbcd   :  { %v2876_v58 = vpop.eup %2875  ;;  %v1290_v62 = vmul.f32 %v2874_v55, %v1288_v61 }
 0xbce   :  { %v1184_v1 = vmul.f32 %v2876_v58, %v1182_v0 }
 0xc2a   :  { %v1293_v56 = vpop.permute.xlu0 %1292 }
 0xc2b   :  { %v1295_v57 = vmul.f32 %v2874_v55, %v1293_v56 }
 0xc2d   :  { %1297 = vrot.lane.b32.xlu0 %v1295_v57, %s2960_s7 }
 0xc2e   :  { %v1187_v59 = vpop.permute.xlu1 %1186 }
 0xc2f   :  { %v1189_v60 = vmul.f32 %v2876_v58, %v1187_v59 }
 0xc31   :  { %1191 = vrot.lane.b32.xlu1 %v1189_v60, %s2960_s7 }
 0xc9f   :  { %v1298_v63 = vpop.permute.xlu0 %1297 }
 0xca0   :  { %v3363_v34 = vadd.f32 %v1298_v63, %v1290_v62 }
 0xca2   :  { %2877 = vtanh.f32 %v3363_v34  ;;  %v1498_v46 = vrot.slane %v3363_v34, 4 }
 0xca3   :  { %v1192_v2 = vpop.permute.xlu1 %1191 }
 0xca4   :  { %v3366_v3 = vadd.f32 %v1192_v2, %v1184_v1 }
 0xca6   :  { %2879 = vtanh.f32 %v3366_v3  ;;  %v1394_v49 = vrot.slane %v3366_v3, 4 }
 0xcaf   :  { %v2878_v4 = vpop.eup %2877 }
 0xcb0   :  { %1303 = vrot.lane.b32.xlu0 %v2878_v4, %s2959_s4 }
 0xcb3   :  { %v2880_v26 = vpop.eup %2879 }
 0xcb4   :  { %1197 = vrot.lane.b32.xlu1 %v2880_v26, %s2959_s4 }
 0xd22   :  { %v1304_v5 = vpop.permute.xlu0 %1303 }
 0xd23   :  { %v1306_v6 = vmul.f32 %v2874_v55, %v1304_v5 }
 0xd25   :  { %v1414_v7 = vrot.slane %v1306_v6, 4 }
 0xd26   :  { %v1198_v8 = vpop.permute.xlu1 %1197 }
 0xd27   :  { %v1200_v9 = vmul.f32 %v2876_v58, %v1198_v8  ;;  %1415 = vrot.lane.b32.xlu1 %v1414_v7, %s2960_s7 }
 0xd29   :  { %1308 = vrot.lane.b32.xlu0 %v1200_v9, %s2960_s7 }
 0xd99   :  { %v1416_v13 = vpop.permute.xlu1 %1415 }
 0xd9a   :  { %2670 = vmatmul.mubr.msk.f32.vlgmr.msra.gmra.mxu1 %vm69_vm0, %v1416_v13 }
 0xd9b   :  { %v1309_v15 = vpop.permute.xlu0 %1308  ;;  %2684 = vmatpush3.msra.mxu1 %v3082_v10  ;;  %2691 = vmatprep.mubr.msk.f32.mxu1 %vm2958_vm1, %v2957_v12 }
 0xd9c   :  { %2659 = vmatmul.mubr.msk.f32.vlgmr.msra.gmra.mxu0 %vm69_vm0, %v1309_v15  ;;  %2685 = vmatprep.subr.mxu1 %v2957_v12 }
 0xd9d   :  { %2686 = vmatpush3.msra.mxu1 %v3099_v14  ;;  %2673 = vmatpush3.msra.mxu0 %v3087_v11 }
 0xd9e   :  { %2687 = vmatprep.subr.mxu1 %v2957_v12  ;;  %2674 = vmatprep.subr.mxu0 %v2957_v12 }
 0xd9f   :  { %2688 = vmatpush3.msra.mxu1 %v3120_v17  ;;  %2675 = vmatpush3.msra.mxu0 %v3111_v16 }
 0xda0   :  { %2689 = vmatprep.subr.mxu1 %v2957_v12  ;;  %2676 = vmatprep.subr.mxu0 %v2957_v12 }
 0xda1   :  { %2690 = vmatpush3.msra.mxu1 %v3134_v19  ;;  %2677 = vmatpush3.msra.mxu0 %v3125_v18 }
 0xda2   :  { %2678 = vmatprep.subr.mxu0 %v2957_v12  ;;  %2680 = vmatprep.mubr.msk.f32.mxu0 %vm2958_vm1, %v2957_v12 }
 0xda3   :  { %2679 = vmatpush3.msra.mxu0 %v3141_v20  ;;  %2705 = vmatprep.subr.mxu1 %v2957_v12 }
 0xda4   :  { %2694 = vmatprep.subr.mxu0 %v2957_v12 }
 0xe5a   :  { %v1485_v21 = vpop.f32.mrf.mxu1 }
 0xe5b   :  { %v1489_v22 = vadd.f32 %v1485_v21, %v3181_v24 }
 0xe5c   :  { %v1378_v23 = vpop.f32.mrf.mxu0  ;;  %v2671_v25 = vpop.f32.mrf.mxu1 }
 0xe5d   :  { %2881 = vtanh.f32 %v1489_v22  ;;  %v1383_v27 = vrot.slane %v1378_v23, 4  ;;  %v2361_v35 = vmul.f32 -1.442695, %v1489_v22 }
 0xe5e   :  { %v2660_v29 = vpop.f32.mrf.mxu0 }
 0xe5f   :  { %v1385_v30 = vadd.f32 %v1383_v27, %v3191_v36 }
 0xe61   :  { %2883 = vtanh.f32 %v1385_v30  ;;  %v2359_v37 = vmul.f32 -1.442695, %v1385_v30 }
 0xe62   :  { %2885 = vpow2.f32 %v2361_v35 }
 0xe63   :  { %2887 = vpow2.f32 %v2359_v37 }
 0xe6a   :  { %v2882_v31 = vpop.eup %2881 }
 0xe6b   :  { %1502 = vrot.lane.b32.xlu0 %v2882_v31, %s2959_s4 }
 0xe6e   :  { %v2884_v32 = vpop.eup %2883 }
 0xe6f   :  { %1398 = vrot.lane.b32.xlu1 %v2884_v32, %s2959_s4  ;;  %v2886_v38 = vpop.eup %2885 }
 0xe70   :  { %v1493_v24 = vadd.f32 1.0, %v2886_v38  ;;  %v2888_v40 = vpop.eup %2887 }
 0xe71   :  { %v1389_v41 = vadd.f32 1.0, %v2888_v40 }
 0xe72   :  { %2889 = vrcp.f32 %v1493_v24 }
 0xe73   :  { %2891 = vrcp.f32 %v1389_v41 }
 0xe7f   :  { %v2890_v42 = vpop.eup %2889 }
 0xe80   :  { %v2892_v39 = vpop.eup %2891  ;;  %v1500_v47 = vmul.f32 %v2890_v42, %v1498_v46 }
 0xe81   :  { %v1396_v51 = vmul.f32 %v2892_v39, %v1394_v49 }
 0xedd   :  { %v1503_v43 = vpop.permute.xlu0 %1502 }
 0xede   :  { %v1505_v36 = vmul.f32 %v2890_v42, %v1503_v43 }
 0xee0   :  { %1507 = vrot.lane.b32.xlu0 %v1505_v36, %s2960_s7 }
 0xee1   :  { %v1399_v44 = vpop.permute.xlu1 %1398 }
 0xee2   :  { %v1401_v45 = vmul.f32 %v2892_v39, %v1399_v44 }
 0xee4   :  { %1403 = vrot.lane.b32.xlu1 %v1401_v45, %s2960_s7 }
 0xf52   :  { %v1508_v48 = vpop.permute.xlu0 %1507 }
 0xf53   :  { %v3403_v50 = vadd.f32 %v1508_v48, %v1500_v47 }
 0xf55   :  { %2893 = vtanh.f32 %v3403_v50  ;;  %v1708_v13 = vrot.slane %v3403_v50, 4 }
 0xf56   :  { %v1404_v52 = vpop.permute.xlu1 %1403 }
 0xf57   :  { %v3406_v53 = vadd.f32 %v1404_v52, %v1396_v51 }
 0xf59   :  { %2895 = vtanh.f32 %v3406_v53  ;;  %v1602_v22 = vrot.slane %v3406_v53, 4 }
 0xf62   :  { %v2894_v54 = vpop.eup %2893 }
 0xf63   :  { %1513 = vrot.lane.b32.xlu0 %v2894_v54, %s2959_s4 }
 0xf66   :  { %v2896_v55 = vpop.eup %2895 }
 0xf67   :  { %1409 = vrot.lane.b32.xlu1 %v2896_v55, %s2959_s4 }
 0xfd5   :  { %v1514_v56 = vpop.permute.xlu0 %1513 }
 0xfd6   :  { %v1516_v57 = vmul.f32 %v2890_v42, %v1514_v56 }
 0xfd8   :  { %1622 = vrot.lane.b32.xlu0 %v1516_v57, %s2960_s7 }
 0xfd9   :  { %v1410_v58 = vpop.permute.xlu1 %1409 }
 0xfda   :  { %v1412_v59 = vmul.f32 %v2892_v39, %v1410_v58 }
 0xfdc   :  { %v1518_v60 = vrot.slane %v1412_v59, 4 }
 0xfde   :  { %1519 = vrot.lane.b32.xlu1 %v1518_v60, %s2960_s7 }
0x104a   :  { %v1623_v61 = vpop.permute.xlu0 %1622 }
0x104b   :  { %2692 = vmatmul.mubr.msk.f32.vlgmr.msra.gmra.mxu1 %vm69_vm0, %v1623_v61 }
0x104c   :  { %2706 = vmatpush3.msra.mxu1 %v3082_v10  ;;  %2713 = vmatprep.mubr.msk.f32.mxu1 %vm2958_vm1, %v2957_v12 }
0x104d   :  { %2707 = vmatprep.subr.mxu1 %v2957_v12 }
0x104e   :  { %2708 = vmatpush3.msra.mxu1 %v3099_v14 }
0x104f   :  { %2709 = vmatprep.subr.mxu1 %v2957_v12 }
0x1050   :  { %v1520_v62 = vpop.permute.xlu1 %1519  ;;  %2710 = vmatpush3.msra.mxu1 %v3120_v17 }
0x1051   :  { %2681 = vmatmul.mubr.msk.f32.vlgmr.msra.gmra.mxu0 %vm69_vm0, %v1520_v62  ;;  %2711 = vmatprep.subr.mxu1 %v2957_v12 }
0x1052   :  { %2695 = vmatpush3.msra.mxu0 %v3087_v11  ;;  %2712 = vmatpush3.msra.mxu1 %v3134_v19 }
0x1053   :  { %2696 = vmatprep.subr.mxu0 %v2957_v12  ;;  %2702 = vmatprep.mubr.msk.f32.mxu0 %vm2958_vm1, %v2957_v12 }
0x1054   :  { %2697 = vmatpush3.msra.mxu0 %v3111_v16  ;;  %2739 = vmatprep.subr.mxu1 %v2957_v12 }
0x1055   :  { %2698 = vmatprep.subr.mxu0 %v2957_v12 }
0x1056   :  { %2699 = vmatpush3.msra.mxu0 %v3125_v18 }
0x1057   :  { %2700 = vmatprep.subr.mxu0 %v2957_v12 }
0x1058   :  { %2701 = vmatpush3.msra.mxu0 %v3141_v20 }
0x1059   :  { %2716 = vmatprep.subr.mxu0 %v2957_v12 }
0x110b   :  { %v1692_v10 = vpop.f32.mrf.mxu1 }
0x110c   :  { %v1697_v11 = vrot.slane %v1692_v10, 4 }
0x110d   :  { %v2693_v14 = vpop.f32.mrf.mxu1 }
0x110e   :  { %v1699_v17 = vadd.f32 %v1697_v11, %v3185_v28 }
0x1110   :  { %2897 = vtanh.f32 %v1699_v17  ;;  %v2365_v20 = vmul.f32 -1.442695, %v1699_v17 }
0x1111   :  { %v1589_v19 = vpop.f32.mrf.mxu0 }
0x1112   :  { %v1593_v16 = vadd.f32 %v1589_v19, %v3187_v33  ;;  %v1964_v19 = vld [vmem:[%s3633_s8 + $0x48] sm:$0xff] }
0x1113   :  { %v2682_v63 = vpop.f32.mrf.mxu0 }
0x1114   :  { %2899 = vtanh.f32 %v1593_v16  ;;  %v2363_v34 = vmul.f32 -1.442695, %v1593_v16  ;;  %v1963_v16 = vld [vmem:[%s3633_s8 + $0x40] sm:$0xff] }
0x1115   :  { %2901 = vpow2.f32 %v2365_v20 }
0x1116   :  { %2903 = vpow2.f32 %v2363_v34  ;;  %v1960_v34 = vld [vmem:[%s3633_s8 + $0x28] sm:$0xff] }
0x111d   :  { %v2898_v0 = vpop.eup %2897 }
0x111e   :  { %1712 = vrot.lane.b32.xlu0 %v2898_v0, %s2959_s4  ;;  %v1962_v0 = vld [vmem:[%s3633_s8 + $0x38] sm:$0xff] }
0x1121   :  { %v2900_v18 = vpop.eup %2899 }
0x1122   :  { %1606 = vrot.lane.b32.xlu1 %v2900_v18, %s2959_s4  ;;  %v2902_v1 = vpop.eup %2901  ;;  %v1961_v18 = vld [vmem:[%s3633_s8 + $0x30] sm:$0xff] }
0x1123   :  { %v1703_v2 = vadd.f32 1.0, %v2902_v1  ;;  %v2904_v3 = vpop.eup %2903  ;;  %v1959_v1 = vld [vmem:[%s3633_s8 + $0x20] sm:$0xff] }
0x1124   :  { %v1597_v4 = vadd.f32 1.0, %v2904_v3  ;;  %v1957_v3 = vld [vmem:[%s3633_s8 + $0x10] sm:$0xff] }
0x1125   :  { %2905 = vrcp.f32 %v1703_v2  ;;  %v1958_v2 = vld [vmem:[%s3633_s8 + $0x18] sm:$0xff] }
0x1126   :  { %2907 = vrcp.f32 %v1597_v4  ;;  %v1956_v4 = vld [vmem:[%s3633_s8 + $0x8] sm:$0xff] }
0x1132   :  { %v2906_v26 = vpop.eup %2905 }
0x1133   :  { %v2908_v7 = vpop.eup %2907  ;;  %v1710_v15 = vmul.f32 %v2906_v26, %v1708_v13 }
0x1134   :  { %v1604_v25 = vmul.f32 %v2908_v7, %v1602_v22 }
0x1190   :  { %v1713_v5 = vpop.permute.xlu0 %1712 }
0x1191   :  { %v1715_v6 = vmul.f32 %v2906_v26, %v1713_v5 }
0x1193   :  { %1717 = vrot.lane.b32.xlu0 %v1715_v6, %s2960_s7 }
0x1194   :  { %v1607_v8 = vpop.permute.xlu1 %1606 }
0x1195   :  { %v1609_v9 = vmul.f32 %v2908_v7, %v1607_v8 }
0x1197   :  { %1611 = vrot.lane.b32.xlu1 %v1609_v9, %s2960_s7  ;;  %v1937_v9 = vld [vmem:[%s3626_s1] sm:$0xf] }
0x1205   :  { %v1718_v21 = vpop.permute.xlu0 %1717 }
0x1206   :  { %v1720_v23 = vadd.f32 %v1718_v21, %v1710_v15  ;;  %v1948_v15 = vrot.slane %v1937_v9, 4 }
0x1208   :  { %2909 = vtanh.f32 %v1720_v23  ;;  %v1918_v59 = vrot.slane %v1720_v23, 4 }
0x1209   :  { %v1612_v27 = vpop.permute.xlu1 %1611 }
0x120a   :  { %v1614_v29 = vadd.f32 %v1612_v27, %v1604_v25 }
0x120c   :  { %2911 = vtanh.f32 %v1614_v29  ;;  %v1814_v62 = vrot.slane %v1614_v29, 4 }
0x1215   :  { %v2910_v30 = vpop.eup %2909 }
0x1216   :  { %1723 = vrot.lane.b32.xlu0 %v2910_v30, %s2959_s4  ;;  %v2055_v30 = vld [vmem:[%s3635_s10 + $0x38] sm:$0xff] }
0x1219   :  { %v2912_v31 = vpop.eup %2911 }
0x121a   :  { %1617 = vrot.lane.b32.xlu1 %v2912_v31, %s2959_s4  ;;  %v2054_v31 = vld [vmem:[%s3635_s10 + $0x30] sm:$0xff] }
0x1288   :  { %v1724_v32 = vpop.permute.xlu0 %1723 }
0x1289   :  { %v1726_v35 = vmul.f32 %v2906_v26, %v1724_v32  ;;  %v1955_v26 = vld [vmem:[%s3633_s8] sm:$0xff]  ;;  %v2053_v32 = vld [vmem:[%s3635_s10 + $0x28] sm:$0xff] }
0x128b   :  { %v1834_v37 = vrot.slane %v1726_v35, 4  ;;  %v2052_v35 = vld [vmem:[%s3635_s10 + $0x20] sm:$0xff] }
0x128c   :  { %v1618_v38 = vpop.permute.xlu1 %1617 }
0x128d   :  { %v1620_v24 = vmul.f32 %v2908_v7, %v1618_v38  ;;  %1835 = vrot.lane.b32.xlu1 %v1834_v37, %s2960_s7  ;;  %v2051_v37 = vld [vmem:[%s3635_s10 + $0x18] sm:$0xff]  ;;  %v2050_v38 = vld [vmem:[%s3635_s10 + $0x10] sm:$0xff] }
0x128f   :  { %1728 = vrot.lane.b32.xlu0 %v1620_v24, %s2960_s7  ;;  %v2049_v24 = vld [vmem:[%s3635_s10 + $0x8] sm:$0xff] }
0x12ff   :  { %v1836_v40 = vpop.permute.xlu1 %1835 }
0x1300   :  { %2714 = vmatmul.mubr.msk.f32.vlgmr.msra.gmra.mxu1 %vm69_vm0, %v1836_v40  ;;  %v2048_v40 = vld [vmem:[%s3635_s10] sm:$0xff] }
0x1301   :  { %v1729_v41 = vpop.permute.xlu0 %1728  ;;  %2755 = vmatprep.mubr.msk.f32.mxu1 %vm2958_vm1, %v2957_v12  ;;  %2740 = vmatpush3.msra.mxu1 %v2055_v30 }
0x1302   :  { %2703 = vmatmul.mubr.msk.f32.vlgmr.msra.gmra.mxu0 %vm69_vm0, %v1729_v41  ;;  %2741 = vmatprep.subr.mxu1 %v2957_v12  ;;  %v2370_v41 = vld [vmem:[%s3634_s9] ss:$0 sm:$0xff] }
0x1303   :  { %2736 = vmatprep.mubr.msk.f32.mxu0 %vm2958_vm1, %v2957_v12  ;;  %2717 = vmatpush3.msra.mxu0 %v1964_v19 }
0x1304   :  { %2718 = vmatprep.subr.mxu0 %v2957_v12  ;;  %2742 = vmatpush3.msra.mxu1 %v2054_v31 }
0x1305   :  { %2719 = vmatpush3.msra.mxu0 %v1963_v16  ;;  %2743 = vmatprep.subr.mxu1 %v2957_v12  ;;  %v2376_v16 = vld [vmem:[%s3640_s15] ss:$0 sm:$0xff] }
0x1306   :  { %2720 = vmatprep.subr.mxu0 %v2957_v12  ;;  %2744 = vmatpush3.msra.mxu1 %v2053_v32 }
0x1307   :  { %2721 = vmatpush3.msra.mxu0 %v1962_v0  ;;  %2745 = vmatprep.subr.mxu1 %v2957_v12 }
0x1308   :  { %2722 = vmatprep.subr.mxu0 %v2957_v12  ;;  %2746 = vmatpush3.msra.mxu1 %v2052_v35 }
0x1309   :  { %2723 = vmatpush3.msra.mxu0 %v1961_v18  ;;  %2747 = vmatprep.subr.mxu1 %v2957_v12 }
0x130a   :  { %2724 = vmatprep.subr.mxu0 %v2957_v12  ;;  %2748 = vmatpush3.msra.mxu1 %v2051_v37 }
0x130b   :  { %2725 = vmatpush3.msra.mxu0 %v1960_v34  ;;  %2749 = vmatprep.subr.mxu1 %v2957_v12 }
0x130c   :  { %2726 = vmatprep.subr.mxu0 %v2957_v12  ;;  %2750 = vmatpush3.msra.mxu1 %v2050_v38 }
0x130d   :  { %2727 = vmatpush3.msra.mxu0 %v1959_v1  ;;  %2751 = vmatprep.subr.mxu1 %v2957_v12 }
0x130e   :  { %2728 = vmatprep.subr.mxu0 %v2957_v12  ;;  %2752 = vmatpush3.msra.mxu1 %v2049_v24 }
0x130f   :  { %2729 = vmatpush3.msra.mxu0 %v1958_v2  ;;  %2753 = vmatprep.subr.mxu1 %v2957_v12 }
0x1310   :  { %2730 = vmatprep.subr.mxu0 %v2957_v12  ;;  %2754 = vmatpush3.msra.mxu1 %v2048_v40 }
0x1311   :  { %2731 = vmatpush3.msra.mxu0 %v1957_v3  ;;  %2758 = vmatprep.subr.mxu1 %v2957_v12 }
0x1312   :  { %2732 = vmatprep.subr.mxu0 %v2957_v12 }
0x1313   :  { %2733 = vmatpush3.msra.mxu0 %v1956_v4 }
0x1314   :  { %2734 = vmatprep.subr.mxu0 %v2957_v12 }
0x1315   :  { %2735 = vmatpush3.msra.mxu0 %v1955_v26 }
0x1316   :  { %2777 = vmatprep.subr.mxu0 %v2957_v12 }
0x13c0   :  { %v1905_v42 = vpop.f32.mrf.mxu1 }
0x13c1   :  { %v1909_v43 = vadd.f32 %v1905_v42, %v3185_v28 }
0x13c2   :  { %v1798_v36 = vpop.f32.mrf.mxu0  ;;  %v2715_v39 = vpop.f32.mrf.mxu1 }
0x13c3   :  { %2913 = vtanh.f32 %v1909_v43  ;;  %v1803_v44 = vrot.slane %v1798_v36, 4  ;;  %v2369_v49 = vmul.f32 -1.442695, %v1909_v43 }
0x13c4   :  { %v2704_v45 = vpop.f32.mrf.mxu0 }
0x13c5   :  { %v1805_v46 = vadd.f32 %v1803_v44, %v3187_v33  ;;  %v2144_v44 = vld [vmem:[%s3637_s12 + $0x38] sm:$0xff]  ;;  %v2143_v45 = vld [vmem:[%s3637_s12 + $0x30] sm:$0xff] }
0x13c7   :  { %2915 = vtanh.f32 %v1805_v46  ;;  %v2367_v50 = vmul.f32 -1.442695, %v1805_v46  ;;  %v2142_v46 = vld [vmem:[%s3637_s12 + $0x28] sm:$0xff] }
0x13c8   :  { %2917 = vpow2.f32 %v2369_v49  ;;  %v2139_v49 = vld [vmem:[%s3637_s12 + $0x10] sm:$0xff] }
0x13c9   :  { %2919 = vpow2.f32 %v2367_v50  ;;  %v2138_v50 = vld [vmem:[%s3637_s12 + $0x8] sm:$0xff] }
0x13d0   :  { %v2914_v47 = vpop.eup %2913 }
0x13d1   :  { %1922 = vrot.lane.b32.xlu0 %v2914_v47, %s2959_s4  ;;  %v2141_v47 = vld [vmem:[%s3637_s12 + $0x20] sm:$0xff] }
0x13d4   :  { %v2916_v48 = vpop.eup %2915 }
0x13d5   :  { %1818 = vrot.lane.b32.xlu1 %v2916_v48, %s2959_s4  ;;  %v2918_v51 = vpop.eup %2917  ;;  %v2140_v48 = vld [vmem:[%s3637_s12 + $0x18] sm:$0xff] }
0x13d6   :  { %v1913_v28 = vadd.f32 1.0, %v2918_v51  ;;  %v2920_v52 = vpop.eup %2919  ;;  %v2137_v51 = vld [vmem:[%s3637_s12] sm:$0xff] }
0x13d7   :  { %v1809_v53 = vadd.f32 1.0, %v2920_v52 }
0x13d8   :  { %2921 = vrcp.f32 %v1913_v28  ;;  %v2372_v28 = vld [vmem:[%s3636_s11] ss:$0 sm:$0xff] }
0x13d9   :  { %2923 = vrcp.f32 %v1809_v53 }
0x13e5   :  { %v2922_v54 = vpop.eup %2921 }
0x13e6   :  { %v2924_v56 = vpop.eup %2923  ;;  %v1920_v60 = vmul.f32 %v2922_v54, %v1918_v59  ;;  %v2229_v59 = vld [vmem:[%s3639_s14 + $0x18] sm:$0xff] }
0x13e7   :  { %v1816_v11 = vmul.f32 %v2924_v56, %v1814_v62  ;;  %v2226_v62 = vld [vmem:[%s3639_s14] sm:$0xff] }
0x1443   :  { %v1923_v55 = vpop.permute.xlu0 %1922 }
0x1444   :  { %v1925_v33 = vmul.f32 %v2922_v54, %v1923_v55 }
0x1446   :  { %1927 = vrot.lane.b32.xlu0 %v1925_v33, %s2960_s7  ;;  %v2233_v33 = vld [vmem:[%s3639_s14 + $0x38] sm:$0xff] }
0x1447   :  { %v1819_v57 = vpop.permute.xlu1 %1818 }
0x1448   :  { %v1821_v58 = vmul.f32 %v2924_v56, %v1819_v57  ;;  %v2231_v57 = vld [vmem:[%s3639_s14 + $0x28] sm:$0xff] }
0x144a   :  { %1823 = vrot.lane.b32.xlu1 %v1821_v58, %s2960_s7  ;;  %v2230_v58 = vld [vmem:[%s3639_s14 + $0x20] sm:$0xff] }
0x14b8   :  { %v1928_v61 = vpop.permute.xlu0 %1927 }
0x14b9   :  { %v1930_v10 = vadd.f32 %v1928_v61, %v1920_v60  ;;  %v2228_v60 = vld [vmem:[%s3639_s14 + $0x10] sm:$0xff]  ;;  %v2227_v61 = vld [vmem:[%s3639_s14 + $0x8] sm:$0xff] }
0x14bb   :  { %2925 = vtanh.f32 %v1930_v10  ;;  %v2374_v10 = vld [vmem:[%s3638_s13] ss:$0 sm:$0xff] }
0x14bc   :  { %v1824_v14 = vpop.permute.xlu1 %1823 }
0x14bd   :  { %v1826_v17 = vadd.f32 %v1824_v14, %v1816_v11 }
0x14bf   :  { %2927 = vtanh.f32 %v1826_v17 }
0x14c8   :  { %v2926_v63 = vpop.eup %2925 }
0x14c9   :  { %1933 = vrot.lane.b32.xlu0 %v2926_v63, %s2959_s4 }
0x14cc   :  { %v2928_v20 = vpop.eup %2927 }
0x14cd   :  { %1829 = vrot.lane.b32.xlu1 %v2928_v20, %s2959_s4 }
0x153b   :  { %v1934_v5 = vpop.permute.xlu0 %1933 }
0x153c   :  { %v1936_v6 = vmul.f32 %v2922_v54, %v1934_v5 }
0x153e   :  { %v1943_v7 = vrot.slane %v1936_v6, 4 }
0x153f   :  { %v1830_v8 = vpop.permute.xlu1 %1829 }
0x1540   :  { %v1832_v13 = vmul.f32 %v2924_v56, %v1830_v8  ;;  %1944 = vrot.lane.b32.xlu1 %v1943_v7, %s2959_s4  ;;  %v2232_v56 = vld [vmem:[%s3639_s14 + $0x30] sm:$0xff]  ;;  %s2961_s14 = smov [#allocation2]  }
0x1541   :  { %s2322_s18 = sshll.u32 %s2961_s14, 4  ;;  %s2323_s18 = int_to_ptr.vmem [resolvable:$true] %s2322_s18 }
0x1542   :  { %1939 = vrot.lane.b32.xlu0 %v1832_v13, %s2960_s7  ;;  %s2935_s13 = scalar_lea.vmem %s2323_s18, 64  ;;  %p2940_p1 = scmp.lt.s32.totalorder %s2323_s18, %s2323_s18 }
0x1543   :  { %p2936_p0 = scmp.ne.s32.totalorder %s2323_s18, %s2935_s13  ;;  %p2941_p2 = scmp.lt.s32.totalorder %s2935_s13, %s2935_s13 }
0x1545   :  { %p2942_p3 = por %p2941_p2, %p2940_p1 }
0x1546   :  { %1949 = vrot.lane.b32.xlu0 %v1948_v15, %s2959_s4 }
0x1547   :  { %p2943_p4 = pnand %p2942_p3, %p2936_p0 }
0x15b2   :  { %v1945_v22 = vpop.permute.xlu1 %1944 }
0x15b4   :  { %v1940_v21 = vpop.permute.xlu0 %1939 }
0x15b5   :  { %v1952_v23 = vsel %vm69_vm0, %v1940_v21, %v1945_v22 }
0x15b8   :  { %v1950_v25 = vpop.permute.xlu0 %1949 }
0x15b9   :  { %v1954_v27 = vsel %vm1953_vm2, %v1952_v23, %v1950_v25 }
0x15ba   :  { %v1973_v29 = vrot.slane %v1954_v27, 4 }
0x15bc   :  { %2737 = vmatmul.mubr.msk.f32.vlgmr.msra.gmra.mxu0 %vm1974_vm3, %v1973_v29 }
0x15bd   :  { %2793 = vmatprep.mubr.msk.f32.mxu0 %vm2958_vm1, %v2957_v12  ;;  %2778 = vmatpush3.msra.mxu0 %v2233_v33 }
0x15be   :  { %2779 = vmatprep.subr.mxu0 %v2957_v12 }
0x15bf   :  { %2780 = vmatpush3.msra.mxu0 %v2232_v56 }
0x15c0   :  { %2781 = vmatprep.subr.mxu0 %v2957_v12 }
0x15c1   :  { %2782 = vmatpush3.msra.mxu0 %v2231_v57 }
0x15c2   :  { %2783 = vmatprep.subr.mxu0 %v2957_v12 }
0x15c3   :  { %2784 = vmatpush3.msra.mxu0 %v2230_v58 }
0x15c4   :  { %2785 = vmatprep.subr.mxu0 %v2957_v12 }
0x15c5   :  { %2786 = vmatpush3.msra.mxu0 %v2229_v59 }
0x15c6   :  { %2787 = vmatprep.subr.mxu0 %v2957_v12 }
0x15c7   :  { %2788 = vmatpush3.msra.mxu0 %v2228_v60 }
0x15c8   :  { %2789 = vmatprep.subr.mxu0 %v2957_v12 }
0x15c9   :  { %2790 = vmatpush3.msra.mxu0 %v2227_v61 }
0x15ca   :  { %2791 = vmatprep.subr.mxu0 %v2957_v12 }
0x15cb   :  { %2792 = vmatpush3.msra.mxu0 %v2226_v62 }
0x167c   :  { %v2043_v42 = vpop.f32.mrf.mxu0 }
0x167d   :  { %v2044_v43 = vadd.f32 %v2370_v41, %v2043_v42 }
0x167e   :  { %v2738_v36 = vpop.f32.mrf.mxu0 }
0x167f   :  { %2929 = vtanh.f32 %v2044_v43 }
0x168c   :  { %v2930_v39 = vpop.eup %2929 }
0x168d   :  { %2756 = vmatmul.mubr.msk.f32.vlgmr.msra.gmra.mxu1 %vm1953_vm2, %v2930_v39 }
0x168e   :  { %2774 = vmatprep.mubr.msk.f32.mxu1 %vm2958_vm1, %v2957_v12  ;;  %2759 = vmatpush3.msra.mxu1 %v2144_v44 }
0x168f   :  { %2760 = vmatprep.subr.mxu1 %v2957_v12 }
0x1690   :  { %2761 = vmatpush3.msra.mxu1 %v2143_v45 }
0x1691   :  { %2762 = vmatprep.subr.mxu1 %v2957_v12 }
0x1692   :  { %2763 = vmatpush3.msra.mxu1 %v2142_v46 }
0x1693   :  { %2764 = vmatprep.subr.mxu1 %v2957_v12 }
0x1694   :  { %2765 = vmatpush3.msra.mxu1 %v2141_v47 }
0x1695   :  { %2766 = vmatprep.subr.mxu1 %v2957_v12 }
0x1696   :  { %2767 = vmatpush3.msra.mxu1 %v2140_v48 }
0x1697   :  { %2768 = vmatprep.subr.mxu1 %v2957_v12 }
0x1698   :  { %2769 = vmatpush3.msra.mxu1 %v2139_v49 }
0x1699   :  { %2770 = vmatprep.subr.mxu1 %v2957_v12 }
0x169a   :  { %2771 = vmatpush3.msra.mxu1 %v2138_v50 }
0x169b   :  { %2772 = vmatprep.subr.mxu1 %v2957_v12 }
0x169c   :  { %2773 = vmatpush3.msra.mxu1 %v2137_v51 }
0x174d   :  { %v2132_v52 = vpop.f32.mrf.mxu1 }
0x174e   :  { %v2133_v53 = vadd.f32 %v2372_v28, %v2132_v52 }
0x174f   :  { %v2757_v54 = vpop.f32.mrf.mxu1 }
0x1750   :  { %2931 = vtanh.f32 %v2133_v53 }
0x175d   :  { %v2932_v55 = vpop.eup %2931 }
0x175e   :  { %2775 = vmatmul.mubr.msk.f32.vlgmr.msra.gmra.mxu1 %vm1953_vm2, %v2932_v55 }
0x181e   :  { %v2221_v11 = vpop.f32.mrf.mxu1 }
0x181f   :  { %v2222_v14 = vadd.f32 %v2374_v10, %v2221_v11 }
0x1820   :  { %v2776_v17 = vpop.f32.mrf.mxu1 }
0x1821   :  { %2933 = vtanh.f32 %v2222_v14 }
0x182e   :  { %v2934_v19 = vpop.eup %2933 }
0x182f   :  { %2794 = vmatmul.mubr.msk.f32.vlgmr.msra.gmra.mxu0 %vm1953_vm2, %v2934_v19 }
0x18ef   :  { %v2310_v63 = vpop.f32.mrf.mxu0 }
0x18f0   :  { %v2311_v12 = vadd.f32 %v2376_v16, %v2310_v63 }
0x18f1   :  { %v2795_v0 = vpop.f32.mrf.mxu0 }
0x18f2   :  { %2315 = vst.msk [vmem:[#allocation2] sm:$0xf] %vm2314_vm4, %v2311_v12 }
0x18f3   :  { %2946 = shalt.err (!%p2943_p4)
}
0x18f4   :  { %2325 = dma.vmem_to_hbm [thread:$0]  %s2323_s18, 64, %s3641_s16, [#allocation3]  }
0x18f5   :  { %2955 = dma.done.wait [#allocation3], 64  }
0x18f6   :  { %2956 = vsyncadd [#allocation3], 4294967232 }
0x18f7   :  { %2329 = vsyncpa [#allocation3], 1 }

</bundles_post_ra>
